<compile_context>
chip_gen: v5e
topology: v5e:2x2
jax: 0.10.0
libtpu: 0.0.40
codegen_flags: <defaults>
</compile_context>

<pallas_src>
import functools

import jax
import jax.numpy as jnp
from jax import lax
from jax.experimental import pallas as pl
from jax.experimental.pallas import tpu as pltpu


# ----------------------------------------------------------------------------
# canvas / slab geometry helpers (all host-side Python ints)
# ----------------------------------------------------------------------------
def _nslab(b, h, w):
    """Width of the shared shifted-slice window over a (b, h+2, w+2) canvas."""
    return b * (h + 2) * (w + 2) - 2 * (w + 2) - 2


def _valid_mask(b, h, w):
    """(1, nslab) f32 mask of slab columns that map to real (b, h, w) sites."""
    wp = w + 2
    o = jnp.arange(_nslab(b, h, w))
    q = o % ((h + 2) * wp)
    return ((q // wp < h) & (q % wp < w)).astype(jnp.float32)[None, :]


# ----------------------------------------------------------------------------
# the fused decoder kernel
# ----------------------------------------------------------------------------
def _decoder_kernel(cfg, *refs):
    """Whole decoder in one kernel invocation.

    Activation layout per layer ("canvas", VMEM scratch):
        canvas[ci, b*(H+2)*(W+2) + (1+h)*(W+2) + (1+w)] = x[b, ci, h, w]
    with physically-zero padding rows/columns.  For a tap (dh, dx) the slice
    canvas[:, s : s+nslab] with s = dh*(W+2)+dx gives, at slab column
    o = b*(H+2)*(W+2) + h*(W+2) + w, exactly x_pad[b, :, h+dh-1, w+dx-1].
    Stacking the 9 taps over the sublane axis yields the im2col matrix; one
    dot against the zero-padded polyphase weight produces both even (rows
    [:Cout]) and odd (rows [Cout:]) output rows of the stride-2 transposed
    conv at every valid column.  Columns whose (h, w) component lands in the
    pad region are junk: they are ignored at scatter time and masked out of
    the BatchNorm statistics.
    """
    B = cfg["B"]
    W = cfg["W"]
    WP = W + 2
    eps = cfg["eps"]
    layers = cfg["layers"]
    n_layers = len(layers)

    it = iter(refs)
    z_ref = next(it)
    wt_ref = next(it)
    lb_ref = next(it)
    per_layer = []
    for lyr in layers:
        w9 = next(it)
        aux = next(it)
        msk = next(it) if lyr["bn"] else None
        per_layer.append((w9, aux, msk))
    out_ref = next(it)
    canv = [next(it) for _ in range(n_layers)]

    # ---- 1) Linear: (B, L) @ (L, D) + b ------------------------------------
    xlin = jnp.dot(z_ref[...], wt_ref[...],
                   preferred_element_type=jnp.float32,
                   precision=lax.Precision.HIGHEST) + lb_ref[...]

    # ---- 2) torch .view(B, C0, H0, W) scattered into canvas 0 --------------
    l0 = layers[0]
    C0, H0 = l0["cin"], l0["H"]
    canv[0][...] = jnp.zeros(canv[0].shape, jnp.float32)
    for b in range(B):
        for c in range(C0):
            for h in range(H0):
                src = (c * H0 + h) * W
                dst = (b * (H0 + 2) + h + 1) * WP + 1
                canv[0][c:c + 1, dst:dst + W] = xlin[b:b + 1, src:src + W]

    # ---- 3) transposed-conv blocks ------------------------------------------
    for li, lyr in enumerate(layers):
        cin, cout, H, bn = lyr["cin"], lyr["cout"], lyr["H"], lyr["bn"]
        w9_ref, aux_ref, msk_ref = per_layer[li]
        nslab = _nslab(B, H, W)

        cv = canv[li][...]                                     # (cin, ncol)
        slabs = [cv[:, dh * WP + dx: dh * WP + dx + nslab]
                 for dh in range(3) for dx in range(3)]
        x9 = jnp.concatenate(slabs, axis=0)                    # (9*cin, nslab)

        # one dot covers both polyphase halves (zero-padded weight rows)
        acc = jnp.dot(w9_ref[...], x9,
                      preferred_element_type=jnp.float32,
                      precision=lax.Precision.HIGHEST)
        acc = acc + aux_ref[:, 0:1]                            # + bias

        if bn:
            # ConvT -> ReLU -> BatchNorm2d (training-mode batch statistics,
            # computed over the valid columns only; exact since the whole
            # batch lives in this single block).
            acc = jnp.maximum(acc, 0.0)
            m = msk_ref[...]                                   # (1, nslab)
            inv_cnt = 1.0 / float(2 * B * H * W)               # = 1/(N*Ho*Wo)
            rs = jnp.sum(acc * m, axis=1, keepdims=True)       # (2*cout, 1)
            mean = (rs[:cout] + rs[cout:]) * inv_cnt
            mean2 = jnp.concatenate([mean, mean], axis=0)
            cen = (acc - mean2) * m
            ss = jnp.sum(cen * cen, axis=1, keepdims=True)
            var = (ss[:cout] + ss[cout:]) * inv_cnt
            var2 = jnp.concatenate([var, var], axis=0)
            scale = aux_ref[:, 1:2] * lax.rsqrt(var2 + eps)
            shift = aux_ref[:, 2:3] - mean2 * scale
            acc = acc * scale + shift

        Hn = 2 * H
        if li + 1 < n_layers:
            # scatter valid columns into the next layer's zero-padded canvas;
            # even-phase rows land at output row 2h, odd-phase at 2h+1.
            nxt = canv[li + 1]
            nxt[...] = jnp.zeros(nxt.shape, jnp.float32)
            for p in range(2):
                for b in range(B):
                    for h in range(H):
                        o0 = (b * (H + 2) + h) * WP
                        d0 = (b * (Hn + 2) + 2 * h + p + 1) * WP + 1
                        nxt[:, d0:d0 + W] = acc[p * cout:(p + 1) * cout,
                                                o0:o0 + W]
        else:
            # final layer: write the NCHW output (row-major (b, co, h') rows).
            for b in range(B):
                for co in range(cout):
                    for p in range(2):
                        for h in range(H):
                            o0 = (b * (H + 2) + h) * WP
                            r = (b * cout + co) * Hn + 2 * h + p
                            row = p * cout + co
                            out_ref[r:r + 1, :] = acc[row:row + 1, o0:o0 + W]


# ----------------------------------------------------------------------------
# Decoder (parameters + fused forward)
# ----------------------------------------------------------------------------
class PallasDecoder:
    def __init__(self, latent_dimension, hidden_channels, output_channels,
                 output_size, padding, padding_mode, kernel_size, pooling_size,
                 activation, key):
        assert activation == "ReLU"   # TODO(synk): other activations not wired up
        kh, kw = kernel_size[0] + 1, kernel_size[1]      # module uses [k0+1, k1]
        # The polyphase fast path is specialised to the module's actual config.
        # TODO(synk): generalize to other kh/kw/stride/padding combinations.
        assert (kh, kw, padding) == (4, 3, 1)
        del padding_mode                                  # ConvT only supports zeros

        self.latent_dimension = latent_dimension
        self.hidden_channels = list(hidden_channels)
        self.output_channels = output_channels
        self.output_size = tuple(output_size)
        self.pooling_size = pooling_size
        self.padding = padding
        self.W = int(output_size[1])
        self.h0 = int(output_size[0] / pooling_size ** len(hidden_channels))
        self.d_lin = int(output_size[0] * output_size[1]
                         / pooling_size ** len(hidden_channels)) * hidden_channels[0]

        chans = list(hidden_channels) + [output_channels]
        self.chans = chans
        self.n_layers = len(chans) - 1
        assert self.h0 * (2 ** self.n_layers) == self.output_size[0]
        assert self.d_lin == hidden_channels[0] * self.h0 * self.W

        keys = jax.random.split(key, 4 + 4 * self.n_layers)
        kit = iter(range(len(keys)))

        # --- torch-shaped parameters (also used by the pure-JAX reference) ---
        self.lin_w = 0.1 * jax.random.normal(
            keys[next(kit)], (self.d_lin, latent_dimension), jnp.float32)
        self.lin_b = 0.1 * jax.random.normal(
            keys[next(kit)], (self.d_lin,), jnp.float32)

        self.conv_w, self.conv_b, self.bn_gamma, self.bn_beta = [], [], [], []
        for i in range(self.n_layers):
            cin, cout = chans[i], chans[i + 1]
            self.conv_w.append(0.1 * jax.random.normal(
                keys[next(kit)], (cin, cout, kh, kw), jnp.float32))
            self.conv_b.append(0.1 * jax.random.normal(
                keys[next(kit)], (cout,), jnp.float32))
            if i < self.n_layers - 1:                     # BN only on non-final blocks
                self.bn_gamma.append(1.0 + 0.05 * jax.random.normal(
                    keys[next(kit)], (cout,), jnp.float32))
                self.bn_beta.append(0.05 * jax.random.normal(
                    keys[next(kit)], (cout,), jnp.float32))

        # --- kernel-side parameter forms, precomputed ONCE --------------------
        self.lin_w_t = jnp.asarray(self.lin_w.T)                      # (L, D)
        self.lin_b_row = self.lin_b.reshape(1, self.d_lin)            # (1, D)
        self.conv_w9, self.conv_aux = [], []
        for i in range(self.n_layers):
            w_t = self.conv_w[i]                                      # (Cin,Cout,KH,KW)
            cin, cout = w_t.shape[0], w_t.shape[1]
            # direct-conv weight (flipped, in/out swapped): (KH, KW, Cin, Cout)
            w_dir = jnp.flip(w_t, axis=(2, 3)).transpose(2, 3, 0, 1)
            zeros_blk = jnp.zeros((3 * cin, cout), jnp.float32)

            def phase(kh_by_dh, _wd=w_dir, _z=zeros_blk, _cin=cin, _cout=cout):
                blocks = []
                for dh in range(3):
                    if dh in kh_by_dh:
                        blocks.append(_wd[kh_by_dh[dh]].reshape(3 * _cin, _cout))
                    else:
                        blocks.append(_z)
                return jnp.concatenate(blocks, axis=0).T              # (cout, 9*cin)

            # even output rows use flipped H-taps {0,2}; odd rows use {1,3};
            # the unused dh block is zero so one dot serves both phases.
            w_even = phase({0: 0, 1: 2})
            w_odd = phase({1: 1, 2: 3})
            self.conv_w9.append(jnp.concatenate([w_even, w_odd], axis=0))

            b = self.conv_b[i]
            if i < self.n_layers - 1:
                g, bt = self.bn_gamma[i], self.bn_beta[i]
            else:
                g = jnp.ones((cout,), jnp.float32)
                bt = jnp.zeros((cout,), jnp.float32)
            self.conv_aux.append(jnp.stack(
                [jnp.concatenate([b, b]), jnp.concatenate([g, g]),
                 jnp.concatenate([bt, bt])], axis=1))                 # (2*Cout, 3)

        self._cache = {}

    # ---- build the single fused pallas_call for a given batch size ----------
    def _build(self, B):
        W = self.W
        WP = W + 2
        layers, H = [], self.h0
        for i in range(self.n_layers):
            layers.append(dict(cin=self.chans[i], cout=self.chans[i + 1],
                               H=H, bn=(i < self.n_layers - 1)))
            H *= 2
        h_out = H
        cfg = dict(B=B, W=W, eps=1e-5, layers=layers)

        inputs = [self.lin_w_t, self.lin_b_row]
        for i, lyr in enumerate(layers):
            inputs.append(self.conv_w9[i])
            inputs.append(self.conv_aux[i])
            if lyr["bn"]:
                inputs.append(_valid_mask(B, lyr["H"], W))
        inputs = tuple(inputs)

        out_rows = B * self.output_channels * h_out
        out_shape = jax.ShapeDtypeStruct((out_rows, W), jnp.float32)

        in_specs = ([pl.BlockSpec((B, self.latent_dimension), lambda i: (0, 0))]
                    + [pl.BlockSpec(a.shape, lambda i: (0, 0)) for a in inputs])
        out_spec = pl.BlockSpec((out_rows, W), lambda i: (0, 0))
        scratch = [pltpu.VMEM((lyr["cin"], B * (lyr["H"] + 2) * WP), jnp.float32)
                   for lyr in layers]

        call = pl.pallas_call(
            functools.partial(_decoder_kernel, cfg),
            out_shape=out_shape,
            grid=(1,),
            in_specs=in_specs,
            out_specs=out_spec,
            scratch_shapes=scratch,
            compiler_params=pltpu.CompilerParams(
                dimension_semantics=("arbitrary",)),
        )

        def run(z):
            o = call(z, *inputs)
            # row-major (b, co, h') rows -> NCHW; free metadata-only reshape.
            return o.reshape(B, self.output_channels, h_out, W)

        return jax.jit(run)

    def __call__(self, z):
        B = int(z.shape[0])
        if B not in self._cache:
            self._cache[B] = self._build(B)
        return self._cache[B](z)


# ----------------------------------------------------------------------------
# Pure-JAX reference (ConvTranspose2d as lhs-dilated conv) for validation
# ----------------------------------------------------------------------------
def reference_forward(dec: PallasDecoder, z):
    B = z.shape[0]
    x = jnp.dot(z, dec.lin_w.T, precision=lax.Precision.HIGHEST) + dec.lin_b
    x = x.reshape(B, dec.hidden_channels[0], dec.h0, dec.output_size[1])   # NCHW
    p = dec.padding
    for li in range(dec.n_layers):
        w_t = dec.conv_w[li]                                  # (Cin, Cout, KH, KW)
        KH, KW = w_t.shape[2], w_t.shape[3]
        w_oihw = jnp.flip(w_t, axis=(2, 3)).transpose(1, 0, 2, 3)
        x = lax.conv_general_dilated(
            x, w_oihw, window_strides=(1, 1),
            padding=[(KH - 1 - p, KH - 1 - p), (KW - 1 - p, KW - 1 - p)],
            lhs_dilation=(2, 1), rhs_dilation=(1, 1),
            dimension_numbers=("NCHW", "OIHW", "NCHW"),
            precision=lax.Precision.HIGHEST)
        x = x + dec.conv_b[li][None, :, None, None]
        if li < dec.n_layers - 1:
            x = jnp.maximum(x, 0.0)
            mean = x.mean(axis=(0, 2, 3), keepdims=True)
            var = jnp.mean((x - mean) ** 2, axis=(0, 2, 3), keepdims=True)
            x = (x - mean) / jnp.sqrt(var + 1e-5)
            x = (x * dec.bn_gamma[li][None, :, None, None]
                 + dec.bn_beta[li][None, :, None, None])
    return x


# ----------------------------------------------------------------------------
if __name__ == "__main__":
    key = jax.random.PRNGKey(0)
    k_param, k_z = jax.random.split(key)

    # Small configuration consistent with the module's constructor.
    latent_dimension = 32
    hidden_channels = [8, 4]
    output_channels = 1
    output_size = (16, 8)
    padding = 1
    kernel_size = [3, 3]          # conv kernels become [4, 3] (stride [2, 1])
    pooling_size = 2

    dec = PallasDecoder(latent_dimension, hidden_channels, output_channels,
                        output_size, padding, "zeros", kernel_size,
                        pooling_size, "ReLU", k_param)

    z = jax.random.normal(k_z, (2, latent_dimension), jnp.float32)

    out = jax.block_until_ready(dec(z))
    assert out.shape == (2, output_channels, output_size[0], output_size[1]), out.shape

    ref = jax.block_until_ready(reference_forward(dec, z))
    max_err = float(jnp.max(jnp.abs(out - ref)))
    assert jnp.allclose(out, ref, atol=1e-2, rtol=1e-2), max_err

    print("KERNEL_OK")
</pallas_src>

<mosaic_0001>
module attributes {stable_mosaic.version = 11 : i64} {
  func.func @_decoder_kernel(%arg0: i32, %arg1: memref<2x32xf32, #tpu.memory_space<vmem>>, %arg2: memref<32x256xf32, #tpu.memory_space<vmem>>, %arg3: memref<1x256xf32, #tpu.memory_space<vmem>>, %arg4: memref<8x72xf32, #tpu.memory_space<vmem>>, %arg5: memref<8x3xf32, #tpu.memory_space<vmem>>, %arg6: memref<1x98xf32, #tpu.memory_space<vmem>>, %arg7: memref<2x36xf32, #tpu.memory_space<vmem>>, %arg8: memref<2x3xf32, #tpu.memory_space<vmem>>, %arg9: memref<32x8xf32, #tpu.memory_space<vmem>>, %arg10: memref<8x120xf32, #tpu.memory_space<vmem>>, %arg11: memref<4x200xf32, #tpu.memory_space<vmem>>) attributes {dimension_semantics = [#tpu.dimension_semantics<arbitrary>], iteration_bounds = array<i64: 1>, scalar_prefetch = 0 : i64, scratch_operands = 2 : i64, tpu.core_type = #tpu.core_type<tc>, window_params = [{pipeline_mode = #tpu.pipeline_mode<synchronous>, transform_indices = @transform_0, window_bounds = array<i64: 2, 32>}, {pipeline_mode = #tpu.pipeline_mode<synchronous>, transform_indices = @transform_1, window_bounds = array<i64: 32, 256>}, {pipeline_mode = #tpu.pipeline_mode<synchronous>, transform_indices = @transform_2, window_bounds = array<i64: 1, 256>}, {pipeline_mode = #tpu.pipeline_mode<synchronous>, transform_indices = @transform_3, window_bounds = array<i64: 8, 72>}, {pipeline_mode = #tpu.pipeline_mode<synchronous>, transform_indices = @transform_4, window_bounds = array<i64: 8, 3>}, {pipeline_mode = #tpu.pipeline_mode<synchronous>, transform_indices = @transform_5, window_bounds = array<i64: 1, 98>}, {pipeline_mode = #tpu.pipeline_mode<synchronous>, transform_indices = @transform_6, window_bounds = array<i64: 2, 36>}, {pipeline_mode = #tpu.pipeline_mode<synchronous>, transform_indices = @transform_7, window_bounds = array<i64: 2, 3>}, {pipeline_mode = #tpu.pipeline_mode<synchronous>, transform_indices = @transform_8, window_bounds = array<i64: 32, 8>}]} {
    %c0 = arith.constant 0 : index
    %c0_0 = arith.constant 0 : index
    %0 = vector.load %arg1[%c0, %c0_0] : memref<2x32xf32, #tpu.memory_space<vmem>>, vector<2x32xf32>
    %c0_1 = arith.constant 0 : index
    %c0_2 = arith.constant 0 : index
    %1 = vector.load %arg2[%c0_1, %c0_2] : memref<32x256xf32, #tpu.memory_space<vmem>>, vector<32x256xf32>
    %cst = arith.constant dense<0.000000e+00> : vector<2x256xf32>
    %2 = tpu.matmul %0, %1, %cst {dimension_numbers = #tpu.dot_dimension_numbers<[1], [0], [0], [1], [0, 0, 1, 1], [], []>, precision = #tpu.contract_precision<fp32>} : vector<2x32xf32>, vector<32x256xf32>, vector<2x256xf32> -> vector<2x256xf32>
    %c0_3 = arith.constant 0 : index
    %c0_4 = arith.constant 0 : index
    %3 = vector.load %arg3[%c0_3, %c0_4] : memref<1x256xf32, #tpu.memory_space<vmem>>, vector<1x256xf32>
    %4 = vector.broadcast %3 : vector<1x256xf32> to vector<2x256xf32>
    %5 = arith.addf %2, %4 : vector<2x256xf32>
    %cst_5 = arith.constant 0.000000e+00 : f32
    %6 = vector.broadcast %cst_5 : f32 to vector<8x120xf32>
    %c0_6 = arith.constant 0 : index
    %c0_7 = arith.constant 0 : index
    %7 = vector.load %arg10[%c0_6, %c0_7] : memref<8x120xf32, #tpu.memory_space<vmem>>, vector<8x120xf32>
    tpu.vector_store %arg10[%c0_6, %c0_7], %6 {strides = array<i32>} : memref<8x120xf32, #tpu.memory_space<vmem>>, vector<8x120xf32>,
    %8 = vector.extract_strided_slice %5 {offsets = [0, 0], sizes = [1, 8], strides = [1, 1]} : vector<2x256xf32> to vector<1x8xf32>
    %c0_8 = arith.constant 0 : index
    %c11 = arith.constant 11 : index
    %9 = vector.load %arg10[%c0_8, %c11] : memref<8x120xf32, #tpu.memory_space<vmem>>, vector<1x8xf32>
    tpu.vector_store %arg10[%c0_8, %c11], %8 {strides = array<i32>} : memref<8x120xf32, #tpu.memory_space<vmem>>, vector<1x8xf32>,
    %10 = vector.extract_strided_slice %5 {offsets = [0, 8], sizes = [1, 8], strides = [1, 1]} : vector<2x256xf32> to vector<1x8xf32>
    %c0_9 = arith.constant 0 : index
    %c21 = arith.constant 21 : index
    %11 = vector.load %arg10[%c0_9, %c21] : memref<8x120xf32, #tpu.memory_space<vmem>>, vector<1x8xf32>
    tpu.vector_store %arg10[%c0_9, %c21], %10 {strides = array<i32>} : memref<8x120xf32, #tpu.memory_space<vmem>>, vector<1x8xf32>,
    %12 = vector.extract_strided_slice %5 {offsets = [0, 16], sizes = [1, 8], strides = [1, 1]} : vector<2x256xf32> to vector<1x8xf32>
    %c0_10 = arith.constant 0 : index
    %c31 = arith.constant 31 : index
    %13 = vector.load %arg10[%c0_10, %c31] : memref<8x120xf32, #tpu.memory_space<vmem>>, vector<1x8xf32>
    tpu.vector_store %arg10[%c0_10, %c31], %12 {strides = array<i32>} : memref<8x120xf32, #tpu.memory_space<vmem>>, vector<1x8xf32>,
    %14 = vector.extract_strided_slice %5 {offsets = [0, 24], sizes = [1, 8], strides = [1, 1]} : vector<2x256xf32> to vector<1x8xf32>
    %c0_11 = arith.constant 0 : index
    %c41 = arith.constant 41 : index
    %15 = vector.load %arg10[%c0_11, %c41] : memref<8x120xf32, #tpu.memory_space<vmem>>, vector<1x8xf32>
    tpu.vector_store %arg10[%c0_11, %c41], %14 {strides = array<i32>} : memref<8x120xf32, #tpu.memory_space<vmem>>, vector<1x8xf32>,
    %16 = vector.extract_strided_slice %5 {offsets = [0, 32], sizes = [1, 8], strides = [1, 1]} : vector<2x256xf32> to vector<1x8xf32>
    %c1 = arith.constant 1 : index
    %c11_12 = arith.constant 11 : index
    %17 = vector.load %arg10[%c1, %c11_12] : memref<8x120xf32, #tpu.memory_space<vmem>>, vector<1x8xf32>
    tpu.vector_store %arg10[%c1, %c11_12], %16 {strides = array<i32>} : memref<8x120xf32, #tpu.memory_space<vmem>>, vector<1x8xf32>,
    %18 = vector.extract_strided_slice %5 {offsets = [0, 40], sizes = [1, 8], strides = [1, 1]} : vector<2x256xf32> to vector<1x8xf32>
    %c1_13 = arith.constant 1 : index
    %c21_14 = arith.constant 21 : index
    %19 = vector.load %arg10[%c1_13, %c21_14] : memref<8x120xf32, #tpu.memory_space<vmem>>, vector<1x8xf32>
    tpu.vector_store %arg10[%c1_13, %c21_14], %18 {strides = array<i32>} : memref<8x120xf32, #tpu.memory_space<vmem>>, vector<1x8xf32>,
    %20 = vector.extract_strided_slice %5 {offsets = [0, 48], sizes = [1, 8], strides = [1, 1]} : vector<2x256xf32> to vector<1x8xf32>
    %c1_15 = arith.constant 1 : index
    %c31_16 = arith.constant 31 : index
    %21 = vector.load %arg10[%c1_15, %c31_16] : memref<8x120xf32, #tpu.memory_space<vmem>>, vector<1x8xf32>
    tpu.vector_store %arg10[%c1_15, %c31_16], %20 {strides = array<i32>} : memref<8x120xf32, #tpu.memory_space<vmem>>, vector<1x8xf32>,
    %22 = vector.extract_strided_slice %5 {offsets = [0, 56], sizes = [1, 8], strides = [1, 1]} : vector<2x256xf32> to vector<1x8xf32>
    %c1_17 = arith.constant 1 : index
    %c41_18 = arith.constant 41 : index
    %23 = vector.load %arg10[%c1_17, %c41_18] : memref<8x120xf32, #tpu.memory_space<vmem>>, vector<1x8xf32>
    tpu.vector_store %arg10[%c1_17, %c41_18], %22 {strides = array<i32>} : memref<8x120xf32, #tpu.memory_space<vmem>>, vector<1x8xf32>,
    %24 = vector.extract_strided_slice %5 {offsets = [0, 64], sizes = [1, 8], strides = [1, 1]} : vector<2x256xf32> to vector<1x8xf32>
    %c2 = arith.constant 2 : index
    %c11_19 = arith.constant 11 : index
    %25 = vector.load %arg10[%c2, %c11_19] : memref<8x120xf32, #tpu.memory_space<vmem>>, vector<1x8xf32>
    tpu.vector_store %arg10[%c2, %c11_19], %24 {strides = array<i32>} : memref<8x120xf32, #tpu.memory_space<vmem>>, vector<1x8xf32>,
    %26 = vector.extract_strided_slice %5 {offsets = [0, 72], sizes = [1, 8], strides = [1, 1]} : vector<2x256xf32> to vector<1x8xf32>
    %c2_20 = arith.constant 2 : index
    %c21_21 = arith.constant 21 : index
    %27 = vector.load %arg10[%c2_20, %c21_21] : memref<8x120xf32, #tpu.memory_space<vmem>>, vector<1x8xf32>
    tpu.vector_store %arg10[%c2_20, %c21_21], %26 {strides = array<i32>} : memref<8x120xf32, #tpu.memory_space<vmem>>, vector<1x8xf32>,
    %28 = vector.extract_strided_slice %5 {offsets = [0, 80], sizes = [1, 8], strides = [1, 1]} : vector<2x256xf32> to vector<1x8xf32>
    %c2_22 = arith.constant 2 : index
    %c31_23 = arith.constant 31 : index
    %29 = vector.load %arg10[%c2_22, %c31_23] : memref<8x120xf32, #tpu.memory_space<vmem>>, vector<1x8xf32>
    tpu.vector_store %arg10[%c2_22, %c31_23], %28 {strides = array<i32>} : memref<8x120xf32, #tpu.memory_space<vmem>>, vector<1x8xf32>,
    %30 = vector.extract_strided_slice %5 {offsets = [0, 88], sizes = [1, 8], strides = [1, 1]} : vector<2x256xf32> to vector<1x8xf32>
    %c2_24 = arith.constant 2 : index
    %c41_25 = arith.constant 41 : index
    %31 = vector.load %arg10[%c2_24, %c41_25] : memref<8x120xf32, #tpu.memory_space<vmem>>, vector<1x8xf32>
    tpu.vector_store %arg10[%c2_24, %c41_25], %30 {strides = array<i32>} : memref<8x120xf32, #tpu.memory_space<vmem>>, vector<1x8xf32>,
    %32 = vector.extract_strided_slice %5 {offsets = [0, 96], sizes = [1, 8], strides = [1, 1]} : vector<2x256xf32> to vector<1x8xf32>
    %c3 = arith.constant 3 : index
    %c11_26 = arith.constant 11 : index
    %33 = vector.load %arg10[%c3, %c11_26] : memref<8x120xf32, #tpu.memory_space<vmem>>, vector<1x8xf32>
    tpu.vector_store %arg10[%c3, %c11_26], %32 {strides = array<i32>} : memref<8x120xf32, #tpu.memory_space<vmem>>, vector<1x8xf32>,
    %34 = vector.extract_strided_slice %5 {offsets = [0, 104], sizes = [1, 8], strides = [1, 1]} : vector<2x256xf32> to vector<1x8xf32>
    %c3_27 = arith.constant 3 : index
    %c21_28 = arith.constant 21 : index
    %35 = vector.load %arg10[%c3_27, %c21_28] : memref<8x120xf32, #tpu.memory_space<vmem>>, vector<1x8xf32>
    tpu.vector_store %arg10[%c3_27, %c21_28], %34 {strides = array<i32>} : memref<8x120xf32, #tpu.memory_space<vmem>>, vector<1x8xf32>,
    %36 = vector.extract_strided_slice %5 {offsets = [0, 112], sizes = [1, 8], strides = [1, 1]} : vector<2x256xf32> to vector<1x8xf32>
    %c3_29 = arith.constant 3 : index
    %c31_30 = arith.constant 31 : index
    %37 = vector.load %arg10[%c3_29, %c31_30] : memref<8x120xf32, #tpu.memory_space<vmem>>, vector<1x8xf32>
    tpu.vector_store %arg10[%c3_29, %c31_30], %36 {strides = array<i32>} : memref<8x120xf32, #tpu.memory_space<vmem>>, vector<1x8xf32>,
    %38 = vector.extract_strided_slice %5 {offsets = [0, 120], sizes = [1, 8], strides = [1, 1]} : vector<2x256xf32> to vector<1x8xf32>
    %c3_31 = arith.constant 3 : index
    %c41_32 = arith.constant 41 : index
    %39 = vector.load %arg10[%c3_31, %c41_32] : memref<8x120xf32, #tpu.memory_space<vmem>>, vector<1x8xf32>
    tpu.vector_store %arg10[%c3_31, %c41_32], %38 {strides = array<i32>} : memref<8x120xf32, #tpu.memory_space<vmem>>, vector<1x8xf32>,
    %40 = vector.extract_strided_slice %5 {offsets = [0, 128], sizes = [1, 8], strides = [1, 1]} : vector<2x256xf32> to vector<1x8xf32>
    %c4 = arith.constant 4 : index
    %c11_33 = arith.constant 11 : index
    %41 = vector.load %arg10[%c4, %c11_33] : memref<8x120xf32, #tpu.memory_space<vmem>>, vector<1x8xf32>
    tpu.vector_store %arg10[%c4, %c11_33], %40 {strides = array<i32>} : memref<8x120xf32, #tpu.memory_space<vmem>>, vector<1x8xf32>,
    %42 = vector.extract_strided_slice %5 {offsets = [0, 136], sizes = [1, 8], strides = [1, 1]} : vector<2x256xf32> to vector<1x8xf32>
    %c4_34 = arith.constant 4 : index
    %c21_35 = arith.constant 21 : index
    %43 = vector.load %arg10[%c4_34, %c21_35] : memref<8x120xf32, #tpu.memory_space<vmem>>, vector<1x8xf32>
    tpu.vector_store %arg10[%c4_34, %c21_35], %42 {strides = array<i32>} : memref<8x120xf32, #tpu.memory_space<vmem>>, vector<1x8xf32>,
    %44 = vector.extract_strided_slice %5 {offsets = [0, 144], sizes = [1, 8], strides = [1, 1]} : vector<2x256xf32> to vector<1x8xf32>
    %c4_36 = arith.constant 4 : index
    %c31_37 = arith.constant 31 : index
    %45 = vector.load %arg10[%c4_36, %c31_37] : memref<8x120xf32, #tpu.memory_space<vmem>>, vector<1x8xf32>
    tpu.vector_store %arg10[%c4_36, %c31_37], %44 {strides = array<i32>} : memref<8x120xf32, #tpu.memory_space<vmem>>, vector<1x8xf32>,
    %46 = vector.extract_strided_slice %5 {offsets = [0, 152], sizes = [1, 8], strides = [1, 1]} : vector<2x256xf32> to vector<1x8xf32>
    %c4_38 = arith.constant 4 : index
    %c41_39 = arith.constant 41 : index
    %47 = vector.load %arg10[%c4_38, %c41_39] : memref<8x120xf32, #tpu.memory_space<vmem>>, vector<1x8xf32>
    tpu.vector_store %arg10[%c4_38, %c41_39], %46 {strides = array<i32>} : memref<8x120xf32, #tpu.memory_space<vmem>>, vector<1x8xf32>,
    %48 = vector.extract_strided_slice %5 {offsets = [0, 160], sizes = [1, 8], strides = [1, 1]} : vector<2x256xf32> to vector<1x8xf32>
    %c5 = arith.constant 5 : index
    %c11_40 = arith.constant 11 : index
    %49 = vector.load %arg10[%c5, %c11_40] : memref<8x120xf32, #tpu.memory_space<vmem>>, vector<1x8xf32>
    tpu.vector_store %arg10[%c5, %c11_40], %48 {strides = array<i32>} : memref<8x120xf32, #tpu.memory_space<vmem>>, vector<1x8xf32>,
    %50 = vector.extract_strided_slice %5 {offsets = [0, 168], sizes = [1, 8], strides = [1, 1]} : vector<2x256xf32> to vector<1x8xf32>
    %c5_41 = arith.constant 5 : index
    %c21_42 = arith.constant 21 : index
    %51 = vector.load %arg10[%c5_41, %c21_42] : memref<8x120xf32, #tpu.memory_space<vmem>>, vector<1x8xf32>
    tpu.vector_store %arg10[%c5_41, %c21_42], %50 {strides = array<i32>} : memref<8x120xf32, #tpu.memory_space<vmem>>, vector<1x8xf32>,
    %52 = vector.extract_strided_slice %5 {offsets = [0, 176], sizes = [1, 8], strides = [1, 1]} : vector<2x256xf32> to vector<1x8xf32>
    %c5_43 = arith.constant 5 : index
    %c31_44 = arith.constant 31 : index
    %53 = vector.load %arg10[%c5_43, %c31_44] : memref<8x120xf32, #tpu.memory_space<vmem>>, vector<1x8xf32>
    tpu.vector_store %arg10[%c5_43, %c31_44], %52 {strides = array<i32>} : memref<8x120xf32, #tpu.memory_space<vmem>>, vector<1x8xf32>,
    %54 = vector.extract_strided_slice %5 {offsets = [0, 184], sizes = [1, 8], strides = [1, 1]} : vector<2x256xf32> to vector<1x8xf32>
    %c5_45 = arith.constant 5 : index
    %c41_46 = arith.constant 41 : index
    %55 = vector.load %arg10[%c5_45, %c41_46] : memref<8x120xf32, #tpu.memory_space<vmem>>, vector<1x8xf32>
    tpu.vector_store %arg10[%c5_45, %c41_46], %54 {strides = array<i32>} : memref<8x120xf32, #tpu.memory_space<vmem>>, vector<1x8xf32>,
    %56 = vector.extract_strided_slice %5 {offsets = [0, 192], sizes = [1, 8], strides = [1, 1]} : vector<2x256xf32> to vector<1x8xf32>
    %c6 = arith.constant 6 : index
    %c11_47 = arith.constant 11 : index
    %57 = vector.load %arg10[%c6, %c11_47] : memref<8x120xf32, #tpu.memory_space<vmem>>, vector<1x8xf32>
    tpu.vector_store %arg10[%c6, %c11_47], %56 {strides = array<i32>} : memref<8x120xf32, #tpu.memory_space<vmem>>, vector<1x8xf32>,
    %58 = vector.extract_strided_slice %5 {offsets = [0, 200], sizes = [1, 8], strides = [1, 1]} : vector<2x256xf32> to vector<1x8xf32>
    %c6_48 = arith.constant 6 : index
    %c21_49 = arith.constant 21 : index
    %59 = vector.load %arg10[%c6_48, %c21_49] : memref<8x120xf32, #tpu.memory_space<vmem>>, vector<1x8xf32>
    tpu.vector_store %arg10[%c6_48, %c21_49], %58 {strides = array<i32>} : memref<8x120xf32, #tpu.memory_space<vmem>>, vector<1x8xf32>,
    %60 = vector.extract_strided_slice %5 {offsets = [0, 208], sizes = [1, 8], strides = [1, 1]} : vector<2x256xf32> to vector<1x8xf32>
    %c6_50 = arith.constant 6 : index
    %c31_51 = arith.constant 31 : index
    %61 = vector.load %arg10[%c6_50, %c31_51] : memref<8x120xf32, #tpu.memory_space<vmem>>, vector<1x8xf32>
    tpu.vector_store %arg10[%c6_50, %c31_51], %60 {strides = array<i32>} : memref<8x120xf32, #tpu.memory_space<vmem>>, vector<1x8xf32>,
    %62 = vector.extract_strided_slice %5 {offsets = [0, 216], sizes = [1, 8], strides = [1, 1]} : vector<2x256xf32> to vector<1x8xf32>
    %c6_52 = arith.constant 6 : index
    %c41_53 = arith.constant 41 : index
    %63 = vector.load %arg10[%c6_52, %c41_53] : memref<8x120xf32, #tpu.memory_space<vmem>>, vector<1x8xf32>
    tpu.vector_store %arg10[%c6_52, %c41_53], %62 {strides = array<i32>} : memref<8x120xf32, #tpu.memory_space<vmem>>, vector<1x8xf32>,
    %64 = vector.extract_strided_slice %5 {offsets = [0, 224], sizes = [1, 8], strides = [1, 1]} : vector<2x256xf32> to vector<1x8xf32>
    %c7 = arith.constant 7 : index
    %c11_54 = arith.constant 11 : index
    %65 = vector.load %arg10[%c7, %c11_54] : memref<8x120xf32, #tpu.memory_space<vmem>>, vector<1x8xf32>
    tpu.vector_store %arg10[%c7, %c11_54], %64 {strides = array<i32>} : memref<8x120xf32, #tpu.memory_space<vmem>>, vector<1x8xf32>,
    %66 = vector.extract_strided_slice %5 {offsets = [0, 232], sizes = [1, 8], strides = [1, 1]} : vector<2x256xf32> to vector<1x8xf32>
    %c7_55 = arith.constant 7 : index
    %c21_56 = arith.constant 21 : index
    %67 = vector.load %arg10[%c7_55, %c21_56] : memref<8x120xf32, #tpu.memory_space<vmem>>, vector<1x8xf32>
    tpu.vector_store %arg10[%c7_55, %c21_56], %66 {strides = array<i32>} : memref<8x120xf32, #tpu.memory_space<vmem>>, vector<1x8xf32>,
    %68 = vector.extract_strided_slice %5 {offsets = [0, 240], sizes = [1, 8], strides = [1, 1]} : vector<2x256xf32> to vector<1x8xf32>
    %c7_57 = arith.constant 7 : index
    %c31_58 = arith.constant 31 : index
    %69 = vector.load %arg10[%c7_57, %c31_58] : memref<8x120xf32, #tpu.memory_space<vmem>>, vector<1x8xf32>
    tpu.vector_store %arg10[%c7_57, %c31_58], %68 {strides = array<i32>} : memref<8x120xf32, #tpu.memory_space<vmem>>, vector<1x8xf32>,
    %70 = vector.extract_strided_slice %5 {offsets = [0, 248], sizes = [1, 8], strides = [1, 1]} : vector<2x256xf32> to vector<1x8xf32>
    %c7_59 = arith.constant 7 : index
    %c41_60 = arith.constant 41 : index
    %71 = vector.load %arg10[%c7_59, %c41_60] : memref<8x120xf32, #tpu.memory_space<vmem>>, vector<1x8xf32>
    tpu.vector_store %arg10[%c7_59, %c41_60], %70 {strides = array<i32>} : memref<8x120xf32, #tpu.memory_space<vmem>>, vector<1x8xf32>,
    %72 = vector.extract_strided_slice %5 {offsets = [1, 0], sizes = [1, 8], strides = [1, 1]} : vector<2x256xf32> to vector<1x8xf32>
    %c0_61 = arith.constant 0 : index
    %c71 = arith.constant 71 : index
    %73 = vector.load %arg10[%c0_61, %c71] : memref<8x120xf32, #tpu.memory_space<vmem>>, vector<1x8xf32>
    tpu.vector_store %arg10[%c0_61, %c71], %72 {strides = array<i32>} : memref<8x120xf32, #tpu.memory_space<vmem>>, vector<1x8xf32>,
    %74 = vector.extract_strided_slice %5 {offsets = [1, 8], sizes = [1, 8], strides = [1, 1]} : vector<2x256xf32> to vector<1x8xf32>
    %c0_62 = arith.constant 0 : index
    %c81 = arith.constant 81 : index
    %75 = vector.load %arg10[%c0_62, %c81] : memref<8x120xf32, #tpu.memory_space<vmem>>, vector<1x8xf32>
    tpu.vector_store %arg10[%c0_62, %c81], %74 {strides = array<i32>} : memref<8x120xf32, #tpu.memory_space<vmem>>, vector<1x8xf32>,
    %76 = vector.extract_strided_slice %5 {offsets = [1, 16], sizes = [1, 8], strides = [1, 1]} : vector<2x256xf32> to vector<1x8xf32>
    %c0_63 = arith.constant 0 : index
    %c91 = arith.constant 91 : index
    %77 = vector.load %arg10[%c0_63, %c91] : memref<8x120xf32, #tpu.memory_space<vmem>>, vector<1x8xf32>
    tpu.vector_store %arg10[%c0_63, %c91], %76 {strides = array<i32>} : memref<8x120xf32, #tpu.memory_space<vmem>>, vector<1x8xf32>,
    %78 = vector.extract_strided_slice %5 {offsets = [1, 24], sizes = [1, 8], strides = [1, 1]} : vector<2x256xf32> to vector<1x8xf32>
    %c0_64 = arith.constant 0 : index
    %c101 = arith.constant 101 : index
    %79 = vector.load %arg10[%c0_64, %c101] : memref<8x120xf32, #tpu.memory_space<vmem>>, vector<1x8xf32>
    tpu.vector_store %arg10[%c0_64, %c101], %78 {strides = array<i32>} : memref<8x120xf32, #tpu.memory_space<vmem>>, vector<1x8xf32>,
    %80 = vector.extract_strided_slice %5 {offsets = [1, 32], sizes = [1, 8], strides = [1, 1]} : vector<2x256xf32> to vector<1x8xf32>
    %c1_65 = arith.constant 1 : index
    %c71_66 = arith.constant 71 : index
    %81 = vector.load %arg10[%c1_65, %c71_66] : memref<8x120xf32, #tpu.memory_space<vmem>>, vector<1x8xf32>
    tpu.vector_store %arg10[%c1_65, %c71_66], %80 {strides = array<i32>} : memref<8x120xf32, #tpu.memory_space<vmem>>, vector<1x8xf32>,
    %82 = vector.extract_strided_slice %5 {offsets = [1, 40], sizes = [1, 8], strides = [1, 1]} : vector<2x256xf32> to vector<1x8xf32>
    %c1_67 = arith.constant 1 : index
    %c81_68 = arith.constant 81 : index
    %83 = vector.load %arg10[%c1_67, %c81_68] : memref<8x120xf32, #tpu.memory_space<vmem>>, vector<1x8xf32>
    tpu.vector_store %arg10[%c1_67, %c81_68], %82 {strides = array<i32>} : memref<8x120xf32, #tpu.memory_space<vmem>>, vector<1x8xf32>,
    %84 = vector.extract_strided_slice %5 {offsets = [1, 48], sizes = [1, 8], strides = [1, 1]} : vector<2x256xf32> to vector<1x8xf32>
    %c1_69 = arith.constant 1 : index
    %c91_70 = arith.constant 91 : index
    %85 = vector.load %arg10[%c1_69, %c91_70] : memref<8x120xf32, #tpu.memory_space<vmem>>, vector<1x8xf32>
    tpu.vector_store %arg10[%c1_69, %c91_70], %84 {strides = array<i32>} : memref<8x120xf32, #tpu.memory_space<vmem>>, vector<1x8xf32>,
    %86 = vector.extract_strided_slice %5 {offsets = [1, 56], sizes = [1, 8], strides = [1, 1]} : vector<2x256xf32> to vector<1x8xf32>
    %c1_71 = arith.constant 1 : index
    %c101_72 = arith.constant 101 : index
    %87 = vector.load %arg10[%c1_71, %c101_72] : memref<8x120xf32, #tpu.memory_space<vmem>>, vector<1x8xf32>
    tpu.vector_store %arg10[%c1_71, %c101_72], %86 {strides = array<i32>} : memref<8x120xf32, #tpu.memory_space<vmem>>, vector<1x8xf32>,
    %88 = vector.extract_strided_slice %5 {offsets = [1, 64], sizes = [1, 8], strides = [1, 1]} : vector<2x256xf32> to vector<1x8xf32>
    %c2_73 = arith.constant 2 : index
    %c71_74 = arith.constant 71 : index
    %89 = vector.load %arg10[%c2_73, %c71_74] : memref<8x120xf32, #tpu.memory_space<vmem>>, vector<1x8xf32>
    tpu.vector_store %arg10[%c2_73, %c71_74], %88 {strides = array<i32>} : memref<8x120xf32, #tpu.memory_space<vmem>>, vector<1x8xf32>,
    %90 = vector.extract_strided_slice %5 {offsets = [1, 72], sizes = [1, 8], strides = [1, 1]} : vector<2x256xf32> to vector<1x8xf32>
    %c2_75 = arith.constant 2 : index
    %c81_76 = arith.constant 81 : index
    %91 = vector.load %arg10[%c2_75, %c81_76] : memref<8x120xf32, #tpu.memory_space<vmem>>, vector<1x8xf32>
    tpu.vector_store %arg10[%c2_75, %c81_76], %90 {strides = array<i32>} : memref<8x120xf32, #tpu.memory_space<vmem>>, vector<1x8xf32>,
    %92 = vector.extract_strided_slice %5 {offsets = [1, 80], sizes = [1, 8], strides = [1, 1]} : vector<2x256xf32> to vector<1x8xf32>
    %c2_77 = arith.constant 2 : index
    %c91_78 = arith.constant 91 : index
    %93 = vector.load %arg10[%c2_77, %c91_78] : memref<8x120xf32, #tpu.memory_space<vmem>>, vector<1x8xf32>
    tpu.vector_store %arg10[%c2_77, %c91_78], %92 {strides = array<i32>} : memref<8x120xf32, #tpu.memory_space<vmem>>, vector<1x8xf32>,
    %94 = vector.extract_strided_slice %5 {offsets = [1, 88], sizes = [1, 8], strides = [1, 1]} : vector<2x256xf32> to vector<1x8xf32>
    %c2_79 = arith.constant 2 : index
    %c101_80 = arith.constant 101 : index
    %95 = vector.load %arg10[%c2_79, %c101_80] : memref<8x120xf32, #tpu.memory_space<vmem>>, vector<1x8xf32>
    tpu.vector_store %arg10[%c2_79, %c101_80], %94 {strides = array<i32>} : memref<8x120xf32, #tpu.memory_space<vmem>>, vector<1x8xf32>,
    %96 = vector.extract_strided_slice %5 {offsets = [1, 96], sizes = [1, 8], strides = [1, 1]} : vector<2x256xf32> to vector<1x8xf32>
    %c3_81 = arith.constant 3 : index
    %c71_82 = arith.constant 71 : index
    %97 = vector.load %arg10[%c3_81, %c71_82] : memref<8x120xf32, #tpu.memory_space<vmem>>, vector<1x8xf32>
    tpu.vector_store %arg10[%c3_81, %c71_82], %96 {strides = array<i32>} : memref<8x120xf32, #tpu.memory_space<vmem>>, vector<1x8xf32>,
    %98 = vector.extract_strided_slice %5 {offsets = [1, 104], sizes = [1, 8], strides = [1, 1]} : vector<2x256xf32> to vector<1x8xf32>
    %c3_83 = arith.constant 3 : index
    %c81_84 = arith.constant 81 : index
    %99 = vector.load %arg10[%c3_83, %c81_84] : memref<8x120xf32, #tpu.memory_space<vmem>>, vector<1x8xf32>
    tpu.vector_store %arg10[%c3_83, %c81_84], %98 {strides = array<i32>} : memref<8x120xf32, #tpu.memory_space<vmem>>, vector<1x8xf32>,
    %100 = vector.extract_strided_slice %5 {offsets = [1, 112], sizes = [1, 8], strides = [1, 1]} : vector<2x256xf32> to vector<1x8xf32>
    %c3_85 = arith.constant 3 : index
    %c91_86 = arith.constant 91 : index
    %101 = vector.load %arg10[%c3_85, %c91_86] : memref<8x120xf32, #tpu.memory_space<vmem>>, vector<1x8xf32>
    tpu.vector_store %arg10[%c3_85, %c91_86], %100 {strides = array<i32>} : memref<8x120xf32, #tpu.memory_space<vmem>>, vector<1x8xf32>,
    %102 = vector.extract_strided_slice %5 {offsets = [1, 120], sizes = [1, 8], strides = [1, 1]} : vector<2x256xf32> to vector<1x8xf32>
    %c3_87 = arith.constant 3 : index
    %c101_88 = arith.constant 101 : index
    %103 = vector.load %arg10[%c3_87, %c101_88] : memref<8x120xf32, #tpu.memory_space<vmem>>, vector<1x8xf32>
    tpu.vector_store %arg10[%c3_87, %c101_88], %102 {strides = array<i32>} : memref<8x120xf32, #tpu.memory_space<vmem>>, vector<1x8xf32>,
    %104 = vector.extract_strided_slice %5 {offsets = [1, 128], sizes = [1, 8], strides = [1, 1]} : vector<2x256xf32> to vector<1x8xf32>
    %c4_89 = arith.constant 4 : index
    %c71_90 = arith.constant 71 : index
    %105 = vector.load %arg10[%c4_89, %c71_90] : memref<8x120xf32, #tpu.memory_space<vmem>>, vector<1x8xf32>
    tpu.vector_store %arg10[%c4_89, %c71_90], %104 {strides = array<i32>} : memref<8x120xf32, #tpu.memory_space<vmem>>, vector<1x8xf32>,
    %106 = vector.extract_strided_slice %5 {offsets = [1, 136], sizes = [1, 8], strides = [1, 1]} : vector<2x256xf32> to vector<1x8xf32>
    %c4_91 = arith.constant 4 : index
    %c81_92 = arith.constant 81 : index
    %107 = vector.load %arg10[%c4_91, %c81_92] : memref<8x120xf32, #tpu.memory_space<vmem>>, vector<1x8xf32>
    tpu.vector_store %arg10[%c4_91, %c81_92], %106 {strides = array<i32>} : memref<8x120xf32, #tpu.memory_space<vmem>>, vector<1x8xf32>,
    %108 = vector.extract_strided_slice %5 {offsets = [1, 144], sizes = [1, 8], strides = [1, 1]} : vector<2x256xf32> to vector<1x8xf32>
    %c4_93 = arith.constant 4 : index
    %c91_94 = arith.constant 91 : index
    %109 = vector.load %arg10[%c4_93, %c91_94] : memref<8x120xf32, #tpu.memory_space<vmem>>, vector<1x8xf32>
    tpu.vector_store %arg10[%c4_93, %c91_94], %108 {strides = array<i32>} : memref<8x120xf32, #tpu.memory_space<vmem>>, vector<1x8xf32>,
    %110 = vector.extract_strided_slice %5 {offsets = [1, 152], sizes = [1, 8], strides = [1, 1]} : vector<2x256xf32> to vector<1x8xf32>
    %c4_95 = arith.constant 4 : index
    %c101_96 = arith.constant 101 : index
    %111 = vector.load %arg10[%c4_95, %c101_96] : memref<8x120xf32, #tpu.memory_space<vmem>>, vector<1x8xf32>
    tpu.vector_store %arg10[%c4_95, %c101_96], %110 {strides = array<i32>} : memref<8x120xf32, #tpu.memory_space<vmem>>, vector<1x8xf32>,
    %112 = vector.extract_strided_slice %5 {offsets = [1, 160], sizes = [1, 8], strides = [1, 1]} : vector<2x256xf32> to vector<1x8xf32>
    %c5_97 = arith.constant 5 : index
    %c71_98 = arith.constant 71 : index
    %113 = vector.load %arg10[%c5_97, %c71_98] : memref<8x120xf32, #tpu.memory_space<vmem>>, vector<1x8xf32>
    tpu.vector_store %arg10[%c5_97, %c71_98], %112 {strides = array<i32>} : memref<8x120xf32, #tpu.memory_space<vmem>>, vector<1x8xf32>,
    %114 = vector.extract_strided_slice %5 {offsets = [1, 168], sizes = [1, 8], strides = [1, 1]} : vector<2x256xf32> to vector<1x8xf32>
    %c5_99 = arith.constant 5 : index
    %c81_100 = arith.constant 81 : index
    %115 = vector.load %arg10[%c5_99, %c81_100] : memref<8x120xf32, #tpu.memory_space<vmem>>, vector<1x8xf32>
    tpu.vector_store %arg10[%c5_99, %c81_100], %114 {strides = array<i32>} : memref<8x120xf32, #tpu.memory_space<vmem>>, vector<1x8xf32>,
    %116 = vector.extract_strided_slice %5 {offsets = [1, 176], sizes = [1, 8], strides = [1, 1]} : vector<2x256xf32> to vector<1x8xf32>
    %c5_101 = arith.constant 5 : index
    %c91_102 = arith.constant 91 : index
    %117 = vector.load %arg10[%c5_101, %c91_102] : memref<8x120xf32, #tpu.memory_space<vmem>>, vector<1x8xf32>
    tpu.vector_store %arg10[%c5_101, %c91_102], %116 {strides = array<i32>} : memref<8x120xf32, #tpu.memory_space<vmem>>, vector<1x8xf32>,
    %118 = vector.extract_strided_slice %5 {offsets = [1, 184], sizes = [1, 8], strides = [1, 1]} : vector<2x256xf32> to vector<1x8xf32>
    %c5_103 = arith.constant 5 : index
    %c101_104 = arith.constant 101 : index
    %119 = vector.load %arg10[%c5_103, %c101_104] : memref<8x120xf32, #tpu.memory_space<vmem>>, vector<1x8xf32>
    tpu.vector_store %arg10[%c5_103, %c101_104], %118 {strides = array<i32>} : memref<8x120xf32, #tpu.memory_space<vmem>>, vector<1x8xf32>,
    %120 = vector.extract_strided_slice %5 {offsets = [1, 192], sizes = [1, 8], strides = [1, 1]} : vector<2x256xf32> to vector<1x8xf32>
    %c6_105 = arith.constant 6 : index
    %c71_106 = arith.constant 71 : index
    %121 = vector.load %arg10[%c6_105, %c71_106] : memref<8x120xf32, #tpu.memory_space<vmem>>, vector<1x8xf32>
    tpu.vector_store %arg10[%c6_105, %c71_106], %120 {strides = array<i32>} : memref<8x120xf32, #tpu.memory_space<vmem>>, vector<1x8xf32>,
    %122 = vector.extract_strided_slice %5 {offsets = [1, 200], sizes = [1, 8], strides = [1, 1]} : vector<2x256xf32> to vector<1x8xf32>
    %c6_107 = arith.constant 6 : index
    %c81_108 = arith.constant 81 : index
    %123 = vector.load %arg10[%c6_107, %c81_108] : memref<8x120xf32, #tpu.memory_space<vmem>>, vector<1x8xf32>
    tpu.vector_store %arg10[%c6_107, %c81_108], %122 {strides = array<i32>} : memref<8x120xf32, #tpu.memory_space<vmem>>, vector<1x8xf32>,
    %124 = vector.extract_strided_slice %5 {offsets = [1, 208], sizes = [1, 8], strides = [1, 1]} : vector<2x256xf32> to vector<1x8xf32>
    %c6_109 = arith.constant 6 : index
    %c91_110 = arith.constant 91 : index
    %125 = vector.load %arg10[%c6_109, %c91_110] : memref<8x120xf32, #tpu.memory_space<vmem>>, vector<1x8xf32>
    tpu.vector_store %arg10[%c6_109, %c91_110], %124 {strides = array<i32>} : memref<8x120xf32, #tpu.memory_space<vmem>>, vector<1x8xf32>,
    %126 = vector.extract_strided_slice %5 {offsets = [1, 216], sizes = [1, 8], strides = [1, 1]} : vector<2x256xf32> to vector<1x8xf32>
    %c6_111 = arith.constant 6 : index
    %c101_112 = arith.constant 101 : index
    %127 = vector.load %arg10[%c6_111, %c101_112] : memref<8x120xf32, #tpu.memory_space<vmem>>, vector<1x8xf32>
    tpu.vector_store %arg10[%c6_111, %c101_112], %126 {strides = array<i32>} : memref<8x120xf32, #tpu.memory_space<vmem>>, vector<1x8xf32>,
    %128 = vector.extract_strided_slice %5 {offsets = [1, 224], sizes = [1, 8], strides = [1, 1]} : vector<2x256xf32> to vector<1x8xf32>
    %c7_113 = arith.constant 7 : index
    %c71_114 = arith.constant 71 : index
    %129 = vector.load %arg10[%c7_113, %c71_114] : memref<8x120xf32, #tpu.memory_space<vmem>>, vector<1x8xf32>
    tpu.vector_store %arg10[%c7_113, %c71_114], %128 {strides = array<i32>} : memref<8x120xf32, #tpu.memory_space<vmem>>, vector<1x8xf32>,
    %130 = vector.extract_strided_slice %5 {offsets = [1, 232], sizes = [1, 8], strides = [1, 1]} : vector<2x256xf32> to vector<1x8xf32>
    %c7_115 = arith.constant 7 : index
    %c81_116 = arith.constant 81 : index
    %131 = vector.load %arg10[%c7_115, %c81_116] : memref<8x120xf32, #tpu.memory_space<vmem>>, vector<1x8xf32>
    tpu.vector_store %arg10[%c7_115, %c81_116], %130 {strides = array<i32>} : memref<8x120xf32, #tpu.memory_space<vmem>>, vector<1x8xf32>,
    %132 = vector.extract_strided_slice %5 {offsets = [1, 240], sizes = [1, 8], strides = [1, 1]} : vector<2x256xf32> to vector<1x8xf32>
    %c7_117 = arith.constant 7 : index
    %c91_118 = arith.constant 91 : index
    %133 = vector.load %arg10[%c7_117, %c91_118] : memref<8x120xf32, #tpu.memory_space<vmem>>, vector<1x8xf32>
    tpu.vector_store %arg10[%c7_117, %c91_118], %132 {strides = array<i32>} : memref<8x120xf32, #tpu.memory_space<vmem>>, vector<1x8xf32>,
    %134 = vector.extract_strided_slice %5 {offsets = [1, 248], sizes = [1, 8], strides = [1, 1]} : vector<2x256xf32> to vector<1x8xf32>
    %c7_119 = arith.constant 7 : index
    %c101_120 = arith.constant 101 : index
    %135 = vector.load %arg10[%c7_119, %c101_120] : memref<8x120xf32, #tpu.memory_space<vmem>>, vector<1x8xf32>
    tpu.vector_store %arg10[%c7_119, %c101_120], %134 {strides = array<i32>} : memref<8x120xf32, #tpu.memory_space<vmem>>, vector<1x8xf32>,
    %c0_121 = arith.constant 0 : index
    %c0_122 = arith.constant 0 : index
    %136 = vector.load %arg10[%c0_121, %c0_122] : memref<8x120xf32, #tpu.memory_space<vmem>>, vector<8x120xf32>
    %137 = vector.extract_strided_slice %136 {offsets = [0, 0], sizes = [8, 98], strides = [1, 1]} : vector<8x120xf32> to vector<8x98xf32>
    %138 = vector.extract_strided_slice %136 {offsets = [0, 1], sizes = [8, 98], strides = [1, 1]} : vector<8x120xf32> to vector<8x98xf32>
    %139 = vector.extract_strided_slice %136 {offsets = [0, 2], sizes = [8, 98], strides = [1, 1]} : vector<8x120xf32> to vector<8x98xf32>
    %140 = vector.extract_strided_slice %136 {offsets = [0, 10], sizes = [8, 98], strides = [1, 1]} : vector<8x120xf32> to vector<8x98xf32>
    %141 = vector.extract_strided_slice %136 {offsets = [0, 11], sizes = [8, 98], strides = [1, 1]} : vector<8x120xf32> to vector<8x98xf32>
    %142 = vector.extract_strided_slice %136 {offsets = [0, 12], sizes = [8, 98], strides = [1, 1]} : vector<8x120xf32> to vector<8x98xf32>
    %143 = vector.extract_strided_slice %136 {offsets = [0, 20], sizes = [8, 98], strides = [1, 1]} : vector<8x120xf32> to vector<8x98xf32>
    %144 = vector.extract_strided_slice %136 {offsets = [0, 21], sizes = [8, 98], strides = [1, 1]} : vector<8x120xf32> to vector<8x98xf32>
    %145 = vector.extract_strided_slice %136 {offsets = [0, 22], sizes = [8, 98], strides = [1, 1]} : vector<8x120xf32> to vector<8x98xf32>
    %146 = tpu.concatenate %137, %138, %139, %140, %141, %142, %143, %144, %145 in 0 : vector<8x98xf32>, vector<8x98xf32>, vector<8x98xf32>, vector<8x98xf32>, vector<8x98xf32>, vector<8x98xf32>, vector<8x98xf32>, vector<8x98xf32>, vector<8x98xf32> -> vector<72x98xf32>
    %c0_123 = arith.constant 0 : index
    %c0_124 = arith.constant 0 : index
    %147 = vector.load %arg4[%c0_123, %c0_124] : memref<8x72xf32, #tpu.memory_space<vmem>>, vector<8x72xf32>
    %cst_125 = arith.constant dense<0.000000e+00> : vector<8x98xf32>
    %148 = tpu.matmul %147, %146, %cst_125 {dimension_numbers = #tpu.dot_dimension_numbers<[1], [0], [0], [1], [0, 0, 1, 1], [], []>, precision = #tpu.contract_precision<fp32>} : vector<8x72xf32>, vector<72x98xf32>, vector<8x98xf32> -> vector<8x98xf32>
    %c0_126 = arith.constant 0 : index
    %c0_127 = arith.constant 0 : index
    %149 = vector.load %arg5[%c0_126, %c0_127] : memref<8x3xf32, #tpu.memory_space<vmem>>, vector<8x1xf32>
    %150 = vector.broadcast %149 : vector<8x1xf32> to vector<8x98xf32>
    %151 = arith.addf %148, %150 : vector<8x98xf32>
    %cst_128 = arith.constant 0.000000e+00 : f32
    %152 = vector.broadcast %cst_128 : f32 to vector<8x98xf32>
    %153 = arith.maximumf %151, %152 : vector<8x98xf32>
    %c0_129 = arith.constant 0 : index
    %c0_130 = arith.constant 0 : index
    %154 = vector.load %arg6[%c0_129, %c0_130] : memref<1x98xf32, #tpu.memory_space<vmem>>, vector<1x98xf32>
    %155 = vector.broadcast %154 : vector<1x98xf32> to vector<8x98xf32>
    %156 = arith.mulf %153, %155 : vector<8x98xf32>
    %cst_131 = arith.constant dense<0.000000e+00> : vector<8xf32>
    %157 = vector.multi_reduction <add>, %156, %cst_131 [1] : vector<8x98xf32> to vector<8xf32>
    %158 = vector.shape_cast %157 : vector<8xf32> to vector<8x1xf32>
    %159 = vector.extract_strided_slice %158 {offsets = [0, 0], sizes = [4, 1], strides = [1, 1]} : vector<8x1xf32> to vector<4x1xf32>
    %160 = vector.extract_strided_slice %158 {offsets = [4, 0], sizes = [4, 1], strides = [1, 1]} : vector<8x1xf32> to vector<4x1xf32>
    %161 = arith.addf %159, %160 : vector<4x1xf32>
    %cst_132 = arith.constant 7.812500e-03 : f32
    %162 = vector.broadcast %cst_132 : f32 to vector<4x1xf32>
    %163 = arith.mulf %161, %162 : vector<4x1xf32>
    %164 = tpu.concatenate %163, %163 in 0 : vector<4x1xf32>, vector<4x1xf32> -> vector<8x1xf32>
    %165 = vector.broadcast %164 : vector<8x1xf32> to vector<8x98xf32>
    %166 = arith.subf %153, %165 : vector<8x98xf32>
    %167 = vector.broadcast %154 : vector<1x98xf32> to vector<8x98xf32>
    %168 = arith.mulf %166, %167 : vector<8x98xf32>
    %169 = arith.mulf %168, %168 : vector<8x98xf32>
    %cst_133 = arith.constant dense<0.000000e+00> : vector<8xf32>
    %170 = vector.multi_reduction <add>, %169, %cst_133 [1] : vector<8x98xf32> to vector<8xf32>
    %171 = vector.shape_cast %170 : vector<8xf32> to vector<8x1xf32>
    %172 = vector.extract_strided_slice %171 {offsets = [0, 0], sizes = [4, 1], strides = [1, 1]} : vector<8x1xf32> to vector<4x1xf32>
    %173 = vector.extract_strided_slice %171 {offsets = [4, 0], sizes = [4, 1], strides = [1, 1]} : vector<8x1xf32> to vector<4x1xf32>
    %174 = arith.addf %172, %173 : vector<4x1xf32>
    %cst_134 = arith.constant 7.812500e-03 : f32
    %175 = vector.broadcast %cst_134 : f32 to vector<4x1xf32>
    %176 = arith.mulf %174, %175 : vector<4x1xf32>
    %177 = tpu.concatenate %176, %176 in 0 : vector<4x1xf32>, vector<4x1xf32> -> vector<8x1xf32>
    %c0_135 = arith.constant 0 : index
    %c1_136 = arith.constant 1 : index
    %178 = vector.load %arg5[%c0_135, %c1_136] : memref<8x3xf32, #tpu.memory_space<vmem>>, vector<8x1xf32>
    %cst_137 = arith.constant 9.99999974E-6 : f32
    %179 = vector.broadcast %cst_137 : f32 to vector<8x1xf32>
    %180 = arith.addf %177, %179 : vector<8x1xf32>
    %181 = math.rsqrt %180 : vector<8x1xf32>
    %182 = arith.mulf %178, %181 : vector<8x1xf32>
    %c0_138 = arith.constant 0 : index
    %c2_139 = arith.constant 2 : index
    %183 = vector.load %arg5[%c0_138, %c2_139] : memref<8x3xf32, #tpu.memory_space<vmem>>, vector<8x1xf32>
    %184 = arith.mulf %164, %182 : vector<8x1xf32>
    %185 = arith.subf %183, %184 : vector<8x1xf32>
    %186 = vector.broadcast %182 : vector<8x1xf32> to vector<8x98xf32>
    %187 = arith.mulf %153, %186 : vector<8x98xf32>
    %188 = vector.broadcast %185 : vector<8x1xf32> to vector<8x98xf32>
    %189 = arith.addf %187, %188 : vector<8x98xf32>
    %cst_140 = arith.constant 0.000000e+00 : f32
    %190 = vector.broadcast %cst_140 : f32 to vector<4x200xf32>
    %c0_141 = arith.constant 0 : index
    %c0_142 = arith.constant 0 : index
    %191 = vector.load %arg11[%c0_141, %c0_142] : memref<4x200xf32, #tpu.memory_space<vmem>>, vector<4x200xf32>
    tpu.vector_store %arg11[%c0_141, %c0_142], %190 {strides = array<i32>} : memref<4x200xf32, #tpu.memory_space<vmem>>, vector<4x200xf32>,
    %192 = vector.extract_strided_slice %189 {offsets = [0, 0], sizes = [4, 8], strides = [1, 1]} : vector<8x98xf32> to vector<4x8xf32>
    %c0_143 = arith.constant 0 : index
    %c11_144 = arith.constant 11 : index
    %193 = vector.load %arg11[%c0_143, %c11_144] : memref<4x200xf32, #tpu.memory_space<vmem>>, vector<4x8xf32>
    tpu.vector_store %arg11[%c0_143, %c11_144], %192 {strides = array<i32>} : memref<4x200xf32, #tpu.memory_space<vmem>>, vector<4x8xf32>,
    %194 = vector.extract_strided_slice %189 {offsets = [0, 10], sizes = [4, 8], strides = [1, 1]} : vector<8x98xf32> to vector<4x8xf32>
    %c0_145 = arith.constant 0 : index
    %c31_146 = arith.constant 31 : index
    %195 = vector.load %arg11[%c0_145, %c31_146] : memref<4x200xf32, #tpu.memory_space<vmem>>, vector<4x8xf32>
    tpu.vector_store %arg11[%c0_145, %c31_146], %194 {strides = array<i32>} : memref<4x200xf32, #tpu.memory_space<vmem>>, vector<4x8xf32>,
    %196 = vector.extract_strided_slice %189 {offsets = [0, 20], sizes = [4, 8], strides = [1, 1]} : vector<8x98xf32> to vector<4x8xf32>
    %c0_147 = arith.constant 0 : index
    %c51 = arith.constant 51 : index
    %197 = vector.load %arg11[%c0_147, %c51] : memref<4x200xf32, #tpu.memory_space<vmem>>, vector<4x8xf32>
    tpu.vector_store %arg11[%c0_147, %c51], %196 {strides = array<i32>} : memref<4x200xf32, #tpu.memory_space<vmem>>, vector<4x8xf32>,
    %198 = vector.extract_strided_slice %189 {offsets = [0, 30], sizes = [4, 8], strides = [1, 1]} : vector<8x98xf32> to vector<4x8xf32>
    %c0_148 = arith.constant 0 : index
    %c71_149 = arith.constant 71 : index
    %199 = vector.load %arg11[%c0_148, %c71_149] : memref<4x200xf32, #tpu.memory_space<vmem>>, vector<4x8xf32>
    tpu.vector_store %arg11[%c0_148, %c71_149], %198 {strides = array<i32>} : memref<4x200xf32, #tpu.memory_space<vmem>>, vector<4x8xf32>,
    %200 = vector.extract_strided_slice %189 {offsets = [0, 60], sizes = [4, 8], strides = [1, 1]} : vector<8x98xf32> to vector<4x8xf32>
    %c0_150 = arith.constant 0 : index
    %c111 = arith.constant 111 : index
    %201 = vector.load %arg11[%c0_150, %c111] : memref<4x200xf32, #tpu.memory_space<vmem>>, vector<4x8xf32>
    tpu.vector_store %arg11[%c0_150, %c111], %200 {strides = array<i32>} : memref<4x200xf32, #tpu.memory_space<vmem>>, vector<4x8xf32>,
    %202 = vector.extract_strided_slice %189 {offsets = [0, 70], sizes = [4, 8], strides = [1, 1]} : vector<8x98xf32> to vector<4x8xf32>
    %c0_151 = arith.constant 0 : index
    %c131 = arith.constant 131 : index
    %203 = vector.load %arg11[%c0_151, %c131] : memref<4x200xf32, #tpu.memory_space<vmem>>, vector<4x8xf32>
    tpu.vector_store %arg11[%c0_151, %c131], %202 {strides = array<i32>} : memref<4x200xf32, #tpu.memory_space<vmem>>, vector<4x8xf32>,
    %204 = vector.extract_strided_slice %189 {offsets = [0, 80], sizes = [4, 8], strides = [1, 1]} : vector<8x98xf32> to vector<4x8xf32>
    %c0_152 = arith.constant 0 : index
    %c151 = arith.constant 151 : index
    %205 = vector.load %arg11[%c0_152, %c151] : memref<4x200xf32, #tpu.memory_space<vmem>>, vector<4x8xf32>
    tpu.vector_store %arg11[%c0_152, %c151], %204 {strides = array<i32>} : memref<4x200xf32, #tpu.memory_space<vmem>>, vector<4x8xf32>,
    %206 = vector.extract_strided_slice %189 {offsets = [0, 90], sizes = [4, 8], strides = [1, 1]} : vector<8x98xf32> to vector<4x8xf32>
    %c0_153 = arith.constant 0 : index
    %c171 = arith.constant 171 : index
    %207 = vector.load %arg11[%c0_153, %c171] : memref<4x200xf32, #tpu.memory_space<vmem>>, vector<4x8xf32>
    tpu.vector_store %arg11[%c0_153, %c171], %206 {strides = array<i32>} : memref<4x200xf32, #tpu.memory_space<vmem>>, vector<4x8xf32>,
    %208 = vector.extract_strided_slice %189 {offsets = [4, 0], sizes = [4, 8], strides = [1, 1]} : vector<8x98xf32> to vector<4x8xf32>
    %c0_154 = arith.constant 0 : index
    %c21_155 = arith.constant 21 : index
    %209 = vector.load %arg11[%c0_154, %c21_155] : memref<4x200xf32, #tpu.memory_space<vmem>>, vector<4x8xf32>
    tpu.vector_store %arg11[%c0_154, %c21_155], %208 {strides = array<i32>} : memref<4x200xf32, #tpu.memory_space<vmem>>, vector<4x8xf32>,
    %210 = vector.extract_strided_slice %189 {offsets = [4, 10], sizes = [4, 8], strides = [1, 1]} : vector<8x98xf32> to vector<4x8xf32>
    %c0_156 = arith.constant 0 : index
    %c41_157 = arith.constant 41 : index
    %211 = vector.load %arg11[%c0_156, %c41_157] : memref<4x200xf32, #tpu.memory_space<vmem>>, vector<4x8xf32>
    tpu.vector_store %arg11[%c0_156, %c41_157], %210 {strides = array<i32>} : memref<4x200xf32, #tpu.memory_space<vmem>>, vector<4x8xf32>,
    %212 = vector.extract_strided_slice %189 {offsets = [4, 20], sizes = [4, 8], strides = [1, 1]} : vector<8x98xf32> to vector<4x8xf32>
    %c0_158 = arith.constant 0 : index
    %c61 = arith.constant 61 : index
    %213 = vector.load %arg11[%c0_158, %c61] : memref<4x200xf32, #tpu.memory_space<vmem>>, vector<4x8xf32>
    tpu.vector_store %arg11[%c0_158, %c61], %212 {strides = array<i32>} : memref<4x200xf32, #tpu.memory_space<vmem>>, vector<4x8xf32>,
    %214 = vector.extract_strided_slice %189 {offsets = [4, 30], sizes = [4, 8], strides = [1, 1]} : vector<8x98xf32> to vector<4x8xf32>
    %c0_159 = arith.constant 0 : index
    %c81_160 = arith.constant 81 : index
    %215 = vector.load %arg11[%c0_159, %c81_160] : memref<4x200xf32, #tpu.memory_space<vmem>>, vector<4x8xf32>
    tpu.vector_store %arg11[%c0_159, %c81_160], %214 {strides = array<i32>} : memref<4x200xf32, #tpu.memory_space<vmem>>, vector<4x8xf32>,
    %216 = vector.extract_strided_slice %189 {offsets = [4, 60], sizes = [4, 8], strides = [1, 1]} : vector<8x98xf32> to vector<4x8xf32>
    %c0_161 = arith.constant 0 : index
    %c121 = arith.constant 121 : index
    %217 = vector.load %arg11[%c0_161, %c121] : memref<4x200xf32, #tpu.memory_space<vmem>>, vector<4x8xf32>
    tpu.vector_store %arg11[%c0_161, %c121], %216 {strides = array<i32>} : memref<4x200xf32, #tpu.memory_space<vmem>>, vector<4x8xf32>,
    %218 = vector.extract_strided_slice %189 {offsets = [4, 70], sizes = [4, 8], strides = [1, 1]} : vector<8x98xf32> to vector<4x8xf32>
    %c0_162 = arith.constant 0 : index
    %c141 = arith.constant 141 : index
    %219 = vector.load %arg11[%c0_162, %c141] : memref<4x200xf32, #tpu.memory_space<vmem>>, vector<4x8xf32>
    tpu.vector_store %arg11[%c0_162, %c141], %218 {strides = array<i32>} : memref<4x200xf32, #tpu.memory_space<vmem>>, vector<4x8xf32>,
    %220 = vector.extract_strided_slice %189 {offsets = [4, 80], sizes = [4, 8], strides = [1, 1]} : vector<8x98xf32> to vector<4x8xf32>
    %c0_163 = arith.constant 0 : index
    %c161 = arith.constant 161 : index
    %221 = vector.load %arg11[%c0_163, %c161] : memref<4x200xf32, #tpu.memory_space<vmem>>, vector<4x8xf32>
    tpu.vector_store %arg11[%c0_163, %c161], %220 {strides = array<i32>} : memref<4x200xf32, #tpu.memory_space<vmem>>, vector<4x8xf32>,
    %222 = vector.extract_strided_slice %189 {offsets = [4, 90], sizes = [4, 8], strides = [1, 1]} : vector<8x98xf32> to vector<4x8xf32>
    %c0_164 = arith.constant 0 : index
    %c181 = arith.constant 181 : index
    %223 = vector.load %arg11[%c0_164, %c181] : memref<4x200xf32, #tpu.memory_space<vmem>>, vector<4x8xf32>
    tpu.vector_store %arg11[%c0_164, %c181], %222 {strides = array<i32>} : memref<4x200xf32, #tpu.memory_space<vmem>>, vector<4x8xf32>,
    %c0_165 = arith.constant 0 : index
    %c0_166 = arith.constant 0 : index
    %224 = vector.load %arg11[%c0_165, %c0_166] : memref<4x200xf32, #tpu.memory_space<vmem>>, vector<4x200xf32>
    %225 = vector.extract_strided_slice %224 {offsets = [0, 0], sizes = [4, 178], strides = [1, 1]} : vector<4x200xf32> to vector<4x178xf32>
    %226 = vector.extract_strided_slice %224 {offsets = [0, 1], sizes = [4, 178], strides = [1, 1]} : vector<4x200xf32> to vector<4x178xf32>
    %227 = vector.extract_strided_slice %224 {offsets = [0, 2], sizes = [4, 178], strides = [1, 1]} : vector<4x200xf32> to vector<4x178xf32>
    %228 = vector.extract_strided_slice %224 {offsets = [0, 10], sizes = [4, 178], strides = [1, 1]} : vector<4x200xf32> to vector<4x178xf32>
    %229 = vector.extract_strided_slice %224 {offsets = [0, 11], sizes = [4, 178], strides = [1, 1]} : vector<4x200xf32> to vector<4x178xf32>
    %230 = vector.extract_strided_slice %224 {offsets = [0, 12], sizes = [4, 178], strides = [1, 1]} : vector<4x200xf32> to vector<4x178xf32>
    %231 = vector.extract_strided_slice %224 {offsets = [0, 20], sizes = [4, 178], strides = [1, 1]} : vector<4x200xf32> to vector<4x178xf32>
    %232 = vector.extract_strided_slice %224 {offsets = [0, 21], sizes = [4, 178], strides = [1, 1]} : vector<4x200xf32> to vector<4x178xf32>
    %233 = vector.extract_strided_slice %224 {offsets = [0, 22], sizes = [4, 178], strides = [1, 1]} : vector<4x200xf32> to vector<4x178xf32>
    %234 = tpu.concatenate %225, %226, %227, %228, %229, %230, %231, %232, %233 in 0 : vector<4x178xf32>, vector<4x178xf32>, vector<4x178xf32>, vector<4x178xf32>, vector<4x178xf32>, vector<4x178xf32>, vector<4x178xf32>, vector<4x178xf32>, vector<4x178xf32> -> vector<36x178xf32>
    %c0_167 = arith.constant 0 : index
    %c0_168 = arith.constant 0 : index
    %235 = vector.load %arg7[%c0_167, %c0_168] : memref<2x36xf32, #tpu.memory_space<vmem>>, vector<2x36xf32>
    %cst_169 = arith.constant dense<0.000000e+00> : vector<2x178xf32>
    %236 = tpu.matmul %235, %234, %cst_169 {dimension_numbers = #tpu.dot_dimension_numbers<[1], [0], [0], [1], [0, 0, 1, 1], [], []>, precision = #tpu.contract_precision<fp32>} : vector<2x36xf32>, vector<36x178xf32>, vector<2x178xf32> -> vector<2x178xf32>
    %c0_170 = arith.constant 0 : index
    %c0_171 = arith.constant 0 : index
    %237 = vector.load %arg8[%c0_170, %c0_171] : memref<2x3xf32, #tpu.memory_space<vmem>>, vector<2x1xf32>
    %238 = vector.broadcast %237 : vector<2x1xf32> to vector<2x178xf32>
    %239 = arith.addf %236, %238 : vector<2x178xf32>
    %240 = vector.extract_strided_slice %239 {offsets = [0, 0], sizes = [1, 8], strides = [1, 1]} : vector<2x178xf32> to vector<1x8xf32>
    %c0_172 = arith.constant 0 : index
    %c0_173 = arith.constant 0 : index
    %241 = vector.load %arg9[%c0_172, %c0_173] : memref<32x8xf32, #tpu.memory_space<vmem>>, vector<1x8xf32>
    tpu.vector_store %arg9[%c0_172, %c0_173], %240 {strides = array<i32>} : memref<32x8xf32, #tpu.memory_space<vmem>>, vector<1x8xf32>,
    %242 = vector.extract_strided_slice %239 {offsets = [0, 10], sizes = [1, 8], strides = [1, 1]} : vector<2x178xf32> to vector<1x8xf32>
    %c2_174 = arith.constant 2 : index
    %c0_175 = arith.constant 0 : index
    %243 = vector.load %arg9[%c2_174, %c0_175] : memref<32x8xf32, #tpu.memory_space<vmem>>, vector<1x8xf32>
    tpu.vector_store %arg9[%c2_174, %c0_175], %242 {strides = array<i32>} : memref<32x8xf32, #tpu.memory_space<vmem>>, vector<1x8xf32>,
    %244 = vector.extract_strided_slice %239 {offsets = [0, 20], sizes = [1, 8], strides = [1, 1]} : vector<2x178xf32> to vector<1x8xf32>
    %c4_176 = arith.constant 4 : index
    %c0_177 = arith.constant 0 : index
    %245 = vector.load %arg9[%c4_176, %c0_177] : memref<32x8xf32, #tpu.memory_space<vmem>>, vector<1x8xf32>
    tpu.vector_store %arg9[%c4_176, %c0_177], %244 {strides = array<i32>} : memref<32x8xf32, #tpu.memory_space<vmem>>, vector<1x8xf32>,
    %246 = vector.extract_strided_slice %239 {offsets = [0, 30], sizes = [1, 8], strides = [1, 1]} : vector<2x178xf32> to vector<1x8xf32>
    %c6_178 = arith.constant 6 : index
    %c0_179 = arith.constant 0 : index
    %247 = vector.load %arg9[%c6_178, %c0_179] : memref<32x8xf32, #tpu.memory_space<vmem>>, vector<1x8xf32>
    tpu.vector_store %arg9[%c6_178, %c0_179], %246 {strides = array<i32>} : memref<32x8xf32, #tpu.memory_space<vmem>>, vector<1x8xf32>,
    %248 = vector.extract_strided_slice %239 {offsets = [0, 40], sizes = [1, 8], strides = [1, 1]} : vector<2x178xf32> to vector<1x8xf32>
    %c8 = arith.constant 8 : index
    %c0_180 = arith.constant 0 : index
    %249 = vector.load %arg9[%c8, %c0_180] : memref<32x8xf32, #tpu.memory_space<vmem>>, vector<1x8xf32>
    tpu.vector_store %arg9[%c8, %c0_180], %248 {strides = array<i32>} : memref<32x8xf32, #tpu.memory_space<vmem>>, vector<1x8xf32>,
    %250 = vector.extract_strided_slice %239 {offsets = [0, 50], sizes = [1, 8], strides = [1, 1]} : vector<2x178xf32> to vector<1x8xf32>
    %c10 = arith.constant 10 : index
    %c0_181 = arith.constant 0 : index
    %251 = vector.load %arg9[%c10, %c0_181] : memref<32x8xf32, #tpu.memory_space<vmem>>, vector<1x8xf32>
    tpu.vector_store %arg9[%c10, %c0_181], %250 {strides = array<i32>} : memref<32x8xf32, #tpu.memory_space<vmem>>, vector<1x8xf32>,
    %252 = vector.extract_strided_slice %239 {offsets = [0, 60], sizes = [1, 8], strides = [1, 1]} : vector<2x178xf32> to vector<1x8xf32>
    %c12 = arith.constant 12 : index
    %c0_182 = arith.constant 0 : index
    %253 = vector.load %arg9[%c12, %c0_182] : memref<32x8xf32, #tpu.memory_space<vmem>>, vector<1x8xf32>
    tpu.vector_store %arg9[%c12, %c0_182], %252 {strides = array<i32>} : memref<32x8xf32, #tpu.memory_space<vmem>>, vector<1x8xf32>,
    %254 = vector.extract_strided_slice %239 {offsets = [0, 70], sizes = [1, 8], strides = [1, 1]} : vector<2x178xf32> to vector<1x8xf32>
    %c14 = arith.constant 14 : index
    %c0_183 = arith.constant 0 : index
    %255 = vector.load %arg9[%c14, %c0_183] : memref<32x8xf32, #tpu.memory_space<vmem>>, vector<1x8xf32>
    tpu.vector_store %arg9[%c14, %c0_183], %254 {strides = array<i32>} : memref<32x8xf32, #tpu.memory_space<vmem>>, vector<1x8xf32>,
    %256 = vector.extract_strided_slice %239 {offsets = [1, 0], sizes = [1, 8], strides = [1, 1]} : vector<2x178xf32> to vector<1x8xf32>
    %c1_184 = arith.constant 1 : index
    %c0_185 = arith.constant 0 : index
    %257 = vector.load %arg9[%c1_184, %c0_185] : memref<32x8xf32, #tpu.memory_space<vmem>>, vector<1x8xf32>
    tpu.vector_store %arg9[%c1_184, %c0_185], %256 {strides = array<i32>} : memref<32x8xf32, #tpu.memory_space<vmem>>, vector<1x8xf32>,
    %258 = vector.extract_strided_slice %239 {offsets = [1, 10], sizes = [1, 8], strides = [1, 1]} : vector<2x178xf32> to vector<1x8xf32>
    %c3_186 = arith.constant 3 : index
    %c0_187 = arith.constant 0 : index
    %259 = vector.load %arg9[%c3_186, %c0_187] : memref<32x8xf32, #tpu.memory_space<vmem>>, vector<1x8xf32>
    tpu.vector_store %arg9[%c3_186, %c0_187], %258 {strides = array<i32>} : memref<32x8xf32, #tpu.memory_space<vmem>>, vector<1x8xf32>,
    %260 = vector.extract_strided_slice %239 {offsets = [1, 20], sizes = [1, 8], strides = [1, 1]} : vector<2x178xf32> to vector<1x8xf32>
    %c5_188 = arith.constant 5 : index
    %c0_189 = arith.constant 0 : index
    %261 = vector.load %arg9[%c5_188, %c0_189] : memref<32x8xf32, #tpu.memory_space<vmem>>, vector<1x8xf32>
    tpu.vector_store %arg9[%c5_188, %c0_189], %260 {strides = array<i32>} : memref<32x8xf32, #tpu.memory_space<vmem>>, vector<1x8xf32>,
    %262 = vector.extract_strided_slice %239 {offsets = [1, 30], sizes = [1, 8], strides = [1, 1]} : vector<2x178xf32> to vector<1x8xf32>
    %c7_190 = arith.constant 7 : index
    %c0_191 = arith.constant 0 : index
    %263 = vector.load %arg9[%c7_190, %c0_191] : memref<32x8xf32, #tpu.memory_space<vmem>>, vector<1x8xf32>
    tpu.vector_store %arg9[%c7_190, %c0_191], %262 {strides = array<i32>} : memref<32x8xf32, #tpu.memory_space<vmem>>, vector<1x8xf32>,
    %264 = vector.extract_strided_slice %239 {offsets = [1, 40], sizes = [1, 8], strides = [1, 1]} : vector<2x178xf32> to vector<1x8xf32>
    %c9 = arith.constant 9 : index
    %c0_192 = arith.constant 0 : index
    %265 = vector.load %arg9[%c9, %c0_192] : memref<32x8xf32, #tpu.memory_space<vmem>>, vector<1x8xf32>
    tpu.vector_store %arg9[%c9, %c0_192], %264 {strides = array<i32>} : memref<32x8xf32, #tpu.memory_space<vmem>>, vector<1x8xf32>,
    %266 = vector.extract_strided_slice %239 {offsets = [1, 50], sizes = [1, 8], strides = [1, 1]} : vector<2x178xf32> to vector<1x8xf32>
    %c11_193 = arith.constant 11 : index
    %c0_194 = arith.constant 0 : index
    %267 = vector.load %arg9[%c11_193, %c0_194] : memref<32x8xf32, #tpu.memory_space<vmem>>, vector<1x8xf32>
    tpu.vector_store %arg9[%c11_193, %c0_194], %266 {strides = array<i32>} : memref<32x8xf32, #tpu.memory_space<vmem>>, vector<1x8xf32>,
    %268 = vector.extract_strided_slice %239 {offsets = [1, 60], sizes = [1, 8], strides = [1, 1]} : vector<2x178xf32> to vector<1x8xf32>
    %c13 = arith.constant 13 : index
    %c0_195 = arith.constant 0 : index
    %269 = vector.load %arg9[%c13, %c0_195] : memref<32x8xf32, #tpu.memory_space<vmem>>, vector<1x8xf32>
    tpu.vector_store %arg9[%c13, %c0_195], %268 {strides = array<i32>} : memref<32x8xf32, #tpu.memory_space<vmem>>, vector<1x8xf32>,
    %270 = vector.extract_strided_slice %239 {offsets = [1, 70], sizes = [1, 8], strides = [1, 1]} : vector<2x178xf32> to vector<1x8xf32>
    %c15 = arith.constant 15 : index
    %c0_196 = arith.constant 0 : index
    %271 = vector.load %arg9[%c15, %c0_196] : memref<32x8xf32, #tpu.memory_space<vmem>>, vector<1x8xf32>
    tpu.vector_store %arg9[%c15, %c0_196], %270 {strides = array<i32>} : memref<32x8xf32, #tpu.memory_space<vmem>>, vector<1x8xf32>,
    %272 = vector.extract_strided_slice %239 {offsets = [0, 100], sizes = [1, 8], strides = [1, 1]} : vector<2x178xf32> to vector<1x8xf32>
    %c16 = arith.constant 16 : index
    %c0_197 = arith.constant 0 : index
    %273 = vector.load %arg9[%c16, %c0_197] : memref<32x8xf32, #tpu.memory_space<vmem>>, vector<1x8xf32>
    tpu.vector_store %arg9[%c16, %c0_197], %272 {strides = array<i32>} : memref<32x8xf32, #tpu.memory_space<vmem>>, vector<1x8xf32>,
    %274 = vector.extract_strided_slice %239 {offsets = [0, 110], sizes = [1, 8], strides = [1, 1]} : vector<2x178xf32> to vector<1x8xf32>
    %c18 = arith.constant 18 : index
    %c0_198 = arith.constant 0 : index
    %275 = vector.load %arg9[%c18, %c0_198] : memref<32x8xf32, #tpu.memory_space<vmem>>, vector<1x8xf32>
    tpu.vector_store %arg9[%c18, %c0_198], %274 {strides = array<i32>} : memref<32x8xf32, #tpu.memory_space<vmem>>, vector<1x8xf32>,
    %276 = vector.extract_strided_slice %239 {offsets = [0, 120], sizes = [1, 8], strides = [1, 1]} : vector<2x178xf32> to vector<1x8xf32>
    %c20 = arith.constant 20 : index
    %c0_199 = arith.constant 0 : index
    %277 = vector.load %arg9[%c20, %c0_199] : memref<32x8xf32, #tpu.memory_space<vmem>>, vector<1x8xf32>
    tpu.vector_store %arg9[%c20, %c0_199], %276 {strides = array<i32>} : memref<32x8xf32, #tpu.memory_space<vmem>>, vector<1x8xf32>,
    %278 = vector.extract_strided_slice %239 {offsets = [0, 130], sizes = [1, 8], strides = [1, 1]} : vector<2x178xf32> to vector<1x8xf32>
    %c22 = arith.constant 22 : index
    %c0_200 = arith.constant 0 : index
    %279 = vector.load %arg9[%c22, %c0_200] : memref<32x8xf32, #tpu.memory_space<vmem>>, vector<1x8xf32>
    tpu.vector_store %arg9[%c22, %c0_200], %278 {strides = array<i32>} : memref<32x8xf32, #tpu.memory_space<vmem>>, vector<1x8xf32>,
    %280 = vector.extract_strided_slice %239 {offsets = [0, 140], sizes = [1, 8], strides = [1, 1]} : vector<2x178xf32> to vector<1x8xf32>
    %c24 = arith.constant 24 : index
    %c0_201 = arith.constant 0 : index
    %281 = vector.load %arg9[%c24, %c0_201] : memref<32x8xf32, #tpu.memory_space<vmem>>, vector<1x8xf32>
    tpu.vector_store %arg9[%c24, %c0_201], %280 {strides = array<i32>} : memref<32x8xf32, #tpu.memory_space<vmem>>, vector<1x8xf32>,
    %282 = vector.extract_strided_slice %239 {offsets = [0, 150], sizes = [1, 8], strides = [1, 1]} : vector<2x178xf32> to vector<1x8xf32>
    %c26 = arith.constant 26 : index
    %c0_202 = arith.constant 0 : index
    %283 = vector.load %arg9[%c26, %c0_202] : memref<32x8xf32, #tpu.memory_space<vmem>>, vector<1x8xf32>
    tpu.vector_store %arg9[%c26, %c0_202], %282 {strides = array<i32>} : memref<32x8xf32, #tpu.memory_space<vmem>>, vector<1x8xf32>,
    %284 = vector.extract_strided_slice %239 {offsets = [0, 160], sizes = [1, 8], strides = [1, 1]} : vector<2x178xf32> to vector<1x8xf32>
    %c28 = arith.constant 28 : index
    %c0_203 = arith.constant 0 : index
    %285 = vector.load %arg9[%c28, %c0_203] : memref<32x8xf32, #tpu.memory_space<vmem>>, vector<1x8xf32>
    tpu.vector_store %arg9[%c28, %c0_203], %284 {strides = array<i32>} : memref<32x8xf32, #tpu.memory_space<vmem>>, vector<1x8xf32>,
    %286 = vector.extract_strided_slice %239 {offsets = [0, 170], sizes = [1, 8], strides = [1, 1]} : vector<2x178xf32> to vector<1x8xf32>
    %c30 = arith.constant 30 : index
    %c0_204 = arith.constant 0 : index
    %287 = vector.load %arg9[%c30, %c0_204] : memref<32x8xf32, #tpu.memory_space<vmem>>, vector<1x8xf32>
    tpu.vector_store %arg9[%c30, %c0_204], %286 {strides = array<i32>} : memref<32x8xf32, #tpu.memory_space<vmem>>, vector<1x8xf32>,
    %288 = vector.extract_strided_slice %239 {offsets = [1, 100], sizes = [1, 8], strides = [1, 1]} : vector<2x178xf32> to vector<1x8xf32>
    %c17 = arith.constant 17 : index
    %c0_205 = arith.constant 0 : index
    %289 = vector.load %arg9[%c17, %c0_205] : memref<32x8xf32, #tpu.memory_space<vmem>>, vector<1x8xf32>
    tpu.vector_store %arg9[%c17, %c0_205], %288 {strides = array<i32>} : memref<32x8xf32, #tpu.memory_space<vmem>>, vector<1x8xf32>,
    %290 = vector.extract_strided_slice %239 {offsets = [1, 110], sizes = [1, 8], strides = [1, 1]} : vector<2x178xf32> to vector<1x8xf32>
    %c19 = arith.constant 19 : index
    %c0_206 = arith.constant 0 : index
    %291 = vector.load %arg9[%c19, %c0_206] : memref<32x8xf32, #tpu.memory_space<vmem>>, vector<1x8xf32>
    tpu.vector_store %arg9[%c19, %c0_206], %290 {strides = array<i32>} : memref<32x8xf32, #tpu.memory_space<vmem>>, vector<1x8xf32>,
    %292 = vector.extract_strided_slice %239 {offsets = [1, 120], sizes = [1, 8], strides = [1, 1]} : vector<2x178xf32> to vector<1x8xf32>
    %c21_207 = arith.constant 21 : index
    %c0_208 = arith.constant 0 : index
    %293 = vector.load %arg9[%c21_207, %c0_208] : memref<32x8xf32, #tpu.memory_space<vmem>>, vector<1x8xf32>
    tpu.vector_store %arg9[%c21_207, %c0_208], %292 {strides = array<i32>} : memref<32x8xf32, #tpu.memory_space<vmem>>, vector<1x8xf32>,
    %294 = vector.extract_strided_slice %239 {offsets = [1, 130], sizes = [1, 8], strides = [1, 1]} : vector<2x178xf32> to vector<1x8xf32>
    %c23 = arith.constant 23 : index
    %c0_209 = arith.constant 0 : index
    %295 = vector.load %arg9[%c23, %c0_209] : memref<32x8xf32, #tpu.memory_space<vmem>>, vector<1x8xf32>
    tpu.vector_store %arg9[%c23, %c0_209], %294 {strides = array<i32>} : memref<32x8xf32, #tpu.memory_space<vmem>>, vector<1x8xf32>,
    %296 = vector.extract_strided_slice %239 {offsets = [1, 140], sizes = [1, 8], strides = [1, 1]} : vector<2x178xf32> to vector<1x8xf32>
    %c25 = arith.constant 25 : index
    %c0_210 = arith.constant 0 : index
    %297 = vector.load %arg9[%c25, %c0_210] : memref<32x8xf32, #tpu.memory_space<vmem>>, vector<1x8xf32>
    tpu.vector_store %arg9[%c25, %c0_210], %296 {strides = array<i32>} : memref<32x8xf32, #tpu.memory_space<vmem>>, vector<1x8xf32>,
    %298 = vector.extract_strided_slice %239 {offsets = [1, 150], sizes = [1, 8], strides = [1, 1]} : vector<2x178xf32> to vector<1x8xf32>
    %c27 = arith.constant 27 : index
    %c0_211 = arith.constant 0 : index
    %299 = vector.load %arg9[%c27, %c0_211] : memref<32x8xf32, #tpu.memory_space<vmem>>, vector<1x8xf32>
    tpu.vector_store %arg9[%c27, %c0_211], %298 {strides = array<i32>} : memref<32x8xf32, #tpu.memory_space<vmem>>, vector<1x8xf32>,
    %300 = vector.extract_strided_slice %239 {offsets = [1, 160], sizes = [1, 8], strides = [1, 1]} : vector<2x178xf32> to vector<1x8xf32>
    %c29 = arith.constant 29 : index
    %c0_212 = arith.constant 0 : index
    %301 = vector.load %arg9[%c29, %c0_212] : memref<32x8xf32, #tpu.memory_space<vmem>>, vector<1x8xf32>
    tpu.vector_store %arg9[%c29, %c0_212], %300 {strides = array<i32>} : memref<32x8xf32, #tpu.memory_space<vmem>>, vector<1x8xf32>,
    %302 = vector.extract_strided_slice %239 {offsets = [1, 170], sizes = [1, 8], strides = [1, 1]} : vector<2x178xf32> to vector<1x8xf32>
    %c31_213 = arith.constant 31 : index
    %c0_214 = arith.constant 0 : index
    %303 = vector.load %arg9[%c31_213, %c0_214] : memref<32x8xf32, #tpu.memory_space<vmem>>, vector<1x8xf32>
    tpu.vector_store %arg9[%c31_213, %c0_214], %302 {strides = array<i32>} : memref<32x8xf32, #tpu.memory_space<vmem>>, vector<1x8xf32>,
    return
  }
  func.func @transform_0(%arg0: i32) -> (i32, i32) {
    %c0_i32 = arith.constant 0 : i32
    %c0_i32_0 = arith.constant 0 : i32
    %c0_i32_1 = arith.constant 0 : i32
    return %c0_i32, %c0_i32_0 : i32, i32
  }
  func.func @transform_1(%arg0: i32) -> (i32, i32) {
    %c0_i32 = arith.constant 0 : i32
    %c0_i32_0 = arith.constant 0 : i32
    %c0_i32_1 = arith.constant 0 : i32
    return %c0_i32, %c0_i32_0 : i32, i32
  }
  func.func @transform_2(%arg0: i32) -> (i32, i32) {
    %c0_i32 = arith.constant 0 : i32
    %c0_i32_0 = arith.constant 0 : i32
    %c0_i32_1 = arith.constant 0 : i32
    return %c0_i32, %c0_i32_0 : i32, i32
  }
  func.func @transform_3(%arg0: i32) -> (i32, i32) {
    %c0_i32 = arith.constant 0 : i32
    %c0_i32_0 = arith.constant 0 : i32
    %c0_i32_1 = arith.constant 0 : i32
    return %c0_i32, %c0_i32_0 : i32, i32
  }
  func.func @transform_4(%arg0: i32) -> (i32, i32) {
    %c0_i32 = arith.constant 0 : i32
    %c0_i32_0 = arith.constant 0 : i32
    %c0_i32_1 = arith.constant 0 : i32
    return %c0_i32, %c0_i32_0 : i32, i32
  }
  func.func @transform_5(%arg0: i32) -> (i32, i32) {
    %c0_i32 = arith.constant 0 : i32
    %c0_i32_0 = arith.constant 0 : i32
    %c0_i32_1 = arith.constant 0 : i32
    return %c0_i32, %c0_i32_0 : i32, i32
  }
  func.func @transform_6(%arg0: i32) -> (i32, i32) {
    %c0_i32 = arith.constant 0 : i32
    %c0_i32_0 = arith.constant 0 : i32
    %c0_i32_1 = arith.constant 0 : i32
    return %c0_i32, %c0_i32_0 : i32, i32
  }
  func.func @transform_7(%arg0: i32) -> (i32, i32) {
    %c0_i32 = arith.constant 0 : i32
    %c0_i32_0 = arith.constant 0 : i32
    %c0_i32_1 = arith.constant 0 : i32
    return %c0_i32, %c0_i32_0 : i32, i32
  }
  func.func @transform_8(%arg0: i32) -> (i32, i32) {
    %c0_i32 = arith.constant 0 : i32
    %c0_i32_0 = arith.constant 0 : i32
    %c0_i32_1 = arith.constant 0 : i32
    return %c0_i32, %c0_i32_0 : i32, i32
  }
}

</mosaic_0001>

<bundles_post_ra>
// kernel: run.1
= control target key start
LH: loop header
LB: loop body
LE: loop exit
PB: predicated region body
PF: predicated region fallthrough
CT: control target
= control target key end

     0   :  { %13 = vsyncpa [#allocation5], 0  ;;  %s2775_s0 = inlined_call_operand.hbm [shape: f32[2,32], index: 0, kind: input, shape index: {}]   ;;  %s2776_s1 = inlined_call_operand.hbm [shape: f32[32,256], index: 1, kind: input, shape index: {}]   ;;  %s2777_s2 = inlined_call_operand.hbm [shape: f32[1,256], index: 2, kind: input, shape index: {}]   ;;  %s2778_s3 = inlined_call_operand.hbm [shape: f32[8,72], index: 3, kind: input, shape index: {}]   ;;  %s2779_s4 = inlined_call_operand.hbm [shape: f32[8,3], index: 4, kind: input, shape index: {}]   ;;  %s2780_s5 = inlined_call_operand.hbm [shape: f32[1,98], index: 5, kind: input, shape index: {}]   ;;  %s2781_s6 = inlined_call_operand.vmem [shape: f32[2,36], index: 6, kind: input, shape index: {}]   ;;  %s2782_s7 = inlined_call_operand.vmem [shape: f32[2,3], index: 7, kind: input, shape index: {}]   ;;  %s2783_s8 = inlined_call_operand.vmem [shape: f32[32,8], index: 8, kind: output, shape index: {}]  }
   0x1   :  { %14 = vsyncpa [#allocation7], 0 }
   0x2   :  { %15 = vsyncpa [#allocation10], 0  ;;  %s32_s29 = sshll.u32 %s2776_s1, 4  ;;  %s33_s29 = int_to_ptr.hbm [resolvable:$true] %s32_s29 }
   0x3   :  { %16 = vsyncpa [#allocation13], 0  ;;  %s2025_s30 = smov [#allocation6]   ;;  %s57_s12 = sshll.u32 %s2778_s3, 4  ;;  %s58_s12 = int_to_ptr.hbm [resolvable:$true] %s57_s12 }
   0x4   :  { %s34_s9 = sshll.u32 %s2025_s30, 4  ;;  %s2026_s13 = smov 256   ;;  %s35_s9 = int_to_ptr.vmem [resolvable:$true] %s34_s9 }
   0x5   :  { %s2027_s14 = smov 16   ;;  %s2028_s15 = smov [#allocation9]  }
   0x6   :  { %40 = dma.hbm_to_vmem [thread:$0]  %s33_s29, 1024, %s35_s9, [#allocation7], %s2026_s13, %s2026_s13, %s2027_s14  }
   0x7   :  { %s59_s16 = sshll.u32 %s2028_s15, 4  ;;  %s22_s19 = sshll.u32 %s2775_s0, 4  ;;  %s60_s16 = int_to_ptr.vmem [resolvable:$true] %s59_s16  ;;  %s23_s19 = int_to_ptr.hbm [resolvable:$true] %s22_s19 }
   0x8   :  { %62 = dma.hbm_to_vmem [thread:$0]  %s58_s12, 128, %s60_s16, [#allocation10]  }
   0x9   :  { %s46_s21 = sshll.u32 %s2777_s2, 4  ;;  %s2029_s22 = smov [#allocation4]   ;;  %s47_s21 = int_to_ptr.hbm [resolvable:$true] %s46_s21 }
   0xa   :  { %s24_s23 = sshll.u32 %s2029_s22, 4  ;;  %s2030_s3 = smov [#allocation8]   ;;  %s25_s23 = int_to_ptr.vmem [resolvable:$true] %s24_s23 }
   0xb   :  { %27 = dma.hbm_to_vmem [thread:$0]  %s23_s19, 32, %s25_s23, [#allocation5]  }
   0xc   :  { %s48_s24 = sshll.u32 %s2030_s3, 4  ;;  %s68_s27 = sshll.u32 %s2779_s4, 4  ;;  %s49_s24 = int_to_ptr.vmem [resolvable:$true] %s48_s24  ;;  %s69_s27 = int_to_ptr.hbm [resolvable:$true] %s68_s27 }
   0xd   :  { %51 = dma.hbm_to_vmem [thread:$0]  %s47_s21, 32, %s49_s24, [#allocation7]  }
   0xe   :  { %s79_s29 = sshll.u32 %s2780_s5, 4  ;;  %s2031_s30 = smov [#allocation11]   ;;  %s80_s29 = int_to_ptr.hbm [resolvable:$true] %s79_s29 }
   0xf   :  { %s70_s2 = sshll.u32 %s2031_s30, 4  ;;  %s2032_s9 = smov [#allocation12]   ;;  %s71_s2 = int_to_ptr.vmem [resolvable:$true] %s70_s2 }
  0x10   :  { %73 = dma.hbm_to_vmem [thread:$0]  %s69_s27, 128, %s71_s2, [#allocation10]  }
  0x11   :  { %s81_s10 = sshll.u32 %s2032_s9, 4  ;;  %s82_s10 = int_to_ptr.vmem [resolvable:$true] %s81_s10 }
  0x12   :  { %84 = dma.hbm_to_vmem [thread:$0]  %s80_s29, 16, %s82_s10, [#allocation13]  }
  0x13   :  { %2017 = dma.done.wait [#allocation5], 32  }
  0x14   :  { %2018 = vsyncadd [#allocation5], 4294967264 }
  0x15   :  { %2019 = dma.done.wait [#allocation7], 1056  }
  0x16   :  { %2020 = vsyncadd [#allocation7], 4294966240 }
  0x17   :  { %2021 = dma.done.wait [#allocation10], 256  }
  0x18   :  { %2022 = vsyncadd [#allocation10], 4294967040 }
  0x19   :  { %2023 = dma.done.wait [#allocation13], 16  }
  0x1a   :  { %2024 = vsyncadd [#allocation13], 4294967280  ;;  %vm128_vm0 = vcmask 261120   ;;  %v120_v0 = vld [vmem:[#allocation6 + $0x30] sm:$0xff]  ;;  %v118_v1 = vld [vmem:[#allocation6 + $0x20] sm:$0xff]  ;;  %s2033_s4 = smov 13  }
  0x1b   :  { %v116_v2 = vld [vmem:[#allocation6 + $0x10] sm:$0xff]  ;;  %v2148_v3 = vand.u32 4294901760, %v120_v0  ;;  %v2150_v4 = vand.u32 4294901760, %v118_v1  ;;  %v114_v6 = vld [vmem:[#allocation6] sm:$0xff]  ;;  %v113_v7 = vld [vmem:[#allocation4] sm:$0x3] }
  0x1c   :  { %v2152_v5 = vand.u32 4294901760, %v116_v2  ;;  %v2154_v8 = vand.u32 4294901760, %v114_v6  ;;  %v130_v9 = vsel %vm128_vm0, %v113_v7, 0  ;;  %v121_v10 = vld [vmem:[#allocation6 + $0x38] sm:$0xff]  ;;  %v119_v11 = vld [vmem:[#allocation6 + $0x28] sm:$0xff]  ;;  %s2034_s5 = smov 75  }
  0x1d   :  { %v117_v12 = vld [vmem:[#allocation6 + $0x18] sm:$0xff]  ;;  %v174_v13 = vsub.f32 %v120_v0, %v2148_v3  ;;  %145 = vmatpush.msra.mxu0 %v2148_v3  ;;  %v180_v14 = vsub.f32 %v118_v1, %v2150_v4  ;;  %245 = vmatpush.msra.mxu3 %v2148_v3  ;;  %v2161_v16 = vand.u32 4294901760, %v130_v9  ;;  %v115_v17 = vld [vmem:[#allocation6 + $0x8] sm:$0xff]  ;;  %v2164_v19 = vand.u32 4294901760, %v121_v10  ;;  %v122_v55 = vld [vmem:[#allocation8] sm:$0x3] }
  0x1e   :  { %v186_v15 = vsub.f32 %v116_v2, %v2152_v5  ;;  %v192_v18 = vsub.f32 %v114_v6, %v2154_v8  ;;  %v2166_v20 = vand.u32 4294901760, %v119_v11  ;;  %v2168_v21 = vand.u32 4294901760, %v117_v12  ;;  %s2035_s11 = smov 11   ;;  %s2036_s12 = smov 45  }
  0x1f   :  { %216 = vmatpush.msra.mxu2 %v174_v13  ;;  %147 = vmatpush.msra.mxu0 %v2150_v4  ;;  %v175_v22 = vand.u32 4294901760, %v174_v13  ;;  %v181_v23 = vand.u32 4294901760, %v180_v14  ;;  %v2172_v24 = vsub.f32 %v130_v9, %v2161_v16  ;;  %v359_v27 = vsub.f32 %v121_v10, %v2164_v19  ;;  %s2037_s13 = smov 43   ;;  %s2038_s14 = smov 107  }
  0x20   :  { %v187_v25 = vand.u32 4294901760, %v186_v15  ;;  %247 = vmatpush.msra.mxu3 %v2150_v4  ;;  %v193_v26 = vand.u32 4294901760, %v192_v18  ;;  %v2177_v28 = vsub.f32 %v119_v11, %v2166_v20  ;;  %v2179_v29 = vand.u32 4294901760, %v115_v17  ;;  %s2039_s15 = smov 111   ;;  %s2040_s16 = smov 77  }
  0x21   :  { %219 = vmatpush.msra.mxu2 %v180_v14  ;;  %v176_v30 = vsub.f32 %v174_v13, %v175_v22  ;;  %149 = vmatpush.msra.mxu0 %v2152_v5  ;;  %v182_v31 = vsub.f32 %v180_v14, %v181_v23  ;;  %v2183_v33 = vand.u32 4294901760, %v2172_v24  ;;  %v360_v34 = vand.u32 4294901760, %v359_v27  ;;  %s2041_s17 = smov 109   ;;  %s2042_s18 = smov 81  }
  0x22   :  { %v188_v32 = vsub.f32 %v186_v15, %v187_v25  ;;  %249 = vmatpush.msra.mxu3 %v2152_v5  ;;  %v366_v35 = vand.u32 4294901760, %v2177_v28  ;;  %v371_v36 = vsub.f32 %v117_v12, %v2168_v21  ;;  %v194_v40 = vsub.f32 %v192_v18, %v193_v26  ;;  %s2043_s19 = smov 15   ;;  %s2044_s1 = smov 79  }
  0x23   :  { %v177_v37 = vand.u32 4294901760, %v176_v30  ;;  %222 = vmatpush.msra.mxu2 %v186_v15  ;;  %v183_v38 = vand.u32 4294901760, %v182_v31  ;;  %151 = vmatpush.msra.mxu0 %v2154_v8  ;;  %v155_v39 = vsub.f32 %v2172_v24, %v2183_v33  ;;  %v361_v41 = vsub.f32 %v359_v27, %v360_v34  ;;  %s2045_s20 = smov 71   ;;  %s2046_s21 = smov 47  }
  0x24   :  { %251 = vmatpush.msra.mxu3 %v2154_v8  ;;  %v367_v42 = vsub.f32 %v2177_v28, %v366_v35  ;;  %v372_v43 = vand.u32 4294901760, %v371_v36  ;;  %v189_v44 = vand.u32 4294901760, %v188_v32  ;;  %v377_v46 = vsub.f32 %v115_v17, %v2179_v29  ;;  %s2047_s22 = smov 17   ;;  %s2048_s23 = smov 103  }
  0x25   :  { %274 = vmatpush.msrb.mxu0 %v175_v22  ;;  %178 = vmatpush.msra.mxu1 %v177_v37  ;;  %v156_v45 = vand.u32 4294901760, %v155_v39  ;;  %v362_v47 = vand.u32 4294901760, %v361_v41  ;;  %v195_v49 = vand.u32 4294901760, %v194_v40  ;;  %v124_v56 = vperm.slane %v122_v55, 0  ;;  %s2049_s3 = smov 113   ;;  %s2050_s24 = smov 49  }
  0x26   :  { %225 = vmatpush.msra.mxu2 %v192_v18  ;;  %255 = vmatmul.f32.vlgmr.msra.gmra.mxu3 %v2183_v33  ;;  %v373_v48 = vsub.f32 %v371_v36, %v372_v43  ;;  %v368_v50 = vand.u32 4294901760, %v367_v42  ;;  %v378_v51 = vand.u32 4294901760, %v377_v46  ;;  %s2051_s25 = smov 41   ;;  %s2052_s26 = smov 7   ;;  %vm502_vm1 = vcmask 982016  }
  0x27   :  { %228 = vmatmul.f32.vlgmr.msra.gmra.mxu2 %v2172_v24  ;;  %184 = vmatpush.msra.mxu1 %v183_v38  ;;  %s2053_s27 = smov 39   ;;  %s2054_s0 = smov 73   ;;  %v2057_v18 = vmov 0.0   ;;  %vm508_vm2 = vcmask 147544   ;;  %vm513_vm3 = vcmask 229544   ;;  %vm518_vm4 = vcmask 311544  }
  0x28   :  { %157 = vmatmul.f32.vlgmr.msra.gmra.mxu0 %v156_v45  ;;  %330 = vmatpush.msrb.mxu2 %v2164_v19  ;;  %v379_v52 = vsub.f32 %v377_v46, %v378_v51  ;;  %v374_v53 = vand.u32 4294901760, %v373_v48  ;;  %s2055_s28 = smov 9   ;;  %s2056_s29 = smov 105   ;;  %503 = vst.msk [vmem:[#allocation2] sm:$0xff] %vm502_vm1, %v2057_v18  ;;  %vm523_vm5 = vcmask 393544   ;;  %vm641_vm6 = vcmask 640569  }
  0x29   :  { %278 = vmatpush.msrb.mxu0 %v181_v23  ;;  %190 = vmatpush.msra.mxu1 %v189_v44  ;;  %vm646_vm7 = vcmask 722569   ;;  %vm648_vm8 = vcmask 804569   ;;  %vm650_vm9 = vcmask 886569   ;;  %s2058_s30 = smov 108   ;;  %s2059_s2 = smov 106   ;;  %vm755_vm10 = vcmask 588800  }
  0x2a   :  { %363 = vmatpush.msrb.mxu3 %v362_v47  ;;  %332 = vmatpush.msrb.mxu2 %v2166_v20  ;;  %v380_v54 = vand.u32 4294901760, %v379_v52  ;;  %s2060_s9 = smov 118   ;;  %s2061_s10 = smov 117   ;;  %vm1015_vm11 = vcmask 801792   ;;  %vm1027_vm12 = vcmask 1043456   ;;  %vm1086_vm0 = vcmask 588804  }
  0x2b   :  { %282 = vmatpush.msrb.mxu0 %v187_v25  ;;  %196 = vmatpush.msra.mxu1 %v195_v49  ;;  %vm1087_vm1 = vmor %vm1086_vm0, %vm1027_vm12  ;;  %vm1172_vm0 = vcmask 7172  }
  0x2c   :  { %369 = vmatpush.msrb.mxu3 %v368_v50  ;;  %198 = vmatmul.f32.vlgmr.msra.gmra.mxu1 %v2161_v16  ;;  %1088 = vst.msk [vmem:[#allocation3] sm:$0xff] %vm1087_vm1, %v2057_v18  ;;  %vm1168_vm1 = vcmask 498688  }
  0x2d   :  { %286 = vmatpush.msrb.mxu0 %v193_v26  ;;  %305 = vmatpush.msrb.mxu1 %v2148_v3 }
  0x2e   :  { %334 = vmatpush.msrb.mxu2 %v2168_v21  ;;  %375 = vmatpush.msrb.mxu3 %v374_v53 }
  0x2f   :  { %401 = vmatpush.msra.mxu0 %v359_v27  ;;  %307 = vmatpush.msrb.mxu1 %v2150_v4 }
  0x30   :  { %288 = vmatmul.f32.vlgmr.msrb.gmra.mxu0 %v2161_v16  ;;  %336 = vmatpush.msrb.mxu2 %v2179_v29 }
  0x31   :  { %381 = vmatpush.msrb.mxu3 %v380_v54  ;;  %309 = vmatpush.msrb.mxu1 %v2152_v5  ;;  %v125_v5 = vperm.slane %v122_v55, 1 }
  0x32   :  { %342 = vmatmul.f32.vlgmr.msrb.gmra.mxu2 %v156_v45  ;;  %383 = vmatmul.f32.vlgmr.msrb.gmra.mxu3 %v2161_v16 }
  0x33   :  { %459 = vmatpush.msra.mxu2 %v360_v34  ;;  %311 = vmatpush.msrb.mxu1 %v2154_v8 }
  0x34   :  { %490 = vmatpush.msra.mxu3 %v2164_v19  ;;  %313 = vmatmul.f32.vlgmr.msrb.gmra.mxu1 %v2161_v16 }
  0x35   :  { %463 = vmatpush.msra.mxu2 %v366_v35  ;;  %404 = vmatpush.msra.mxu0 %v2177_v28 }
  0x36   :  { %430 = vmatpush.msra.mxu1 %v2164_v19  ;;  %492 = vmatpush.msra.mxu3 %v2166_v20 }
  0x37   :  { %467 = vmatpush.msra.mxu2 %v372_v43  ;;  %407 = vmatpush.msra.mxu0 %v371_v36 }
  0x38   :  { %432 = vmatpush.msra.mxu1 %v2166_v20  ;;  %494 = vmatpush.msra.mxu3 %v2168_v21 }
  0x39   :  { %471 = vmatpush.msra.mxu2 %v378_v51  ;;  %410 = vmatpush.msra.mxu0 %v377_v46 }
  0x3a   :  { %473 = vmatmul.f32.vlgmr.msra.gmra.mxu2 %v2161_v16  ;;  %434 = vmatpush.msra.mxu1 %v2168_v21 }
  0x3b   :  { %496 = vmatpush.msra.mxu3 %v2179_v29  ;;  %413 = vmatmul.f32.vlgmr.msra.gmra.mxu0 %v2172_v24 }
  0x3c   :  { %498 = vmatmul.f32.vlgmr.msra.gmra.mxu3 %v2161_v16  ;;  %436 = vmatpush.msra.mxu1 %v2179_v29 }
  0x3d   :  { %440 = vmatmul.f32.vlgmr.msra.gmra.mxu1 %v2183_v33 }
  0xa5   :  { %v158_v57 = vpop.f32.mrf.mxu0 }
  0xa6   :  { %v159_v58 = vadd.f32 %v158_v57, %v124_v56 }
  0xa9   :  { %v199_v59 = vpop.f32.mrf.mxu1  ;;  %v256_v62 = vpop.f32.mrf.mxu3 }
  0xaa   :  { %v229_v60 = vpop.f32.mrf.mxu2  ;;  %v200_v61 = vadd.f32 %v199_v59, %v159_v58 }
  0xac   :  { %v230_v63 = vadd.f32 %v229_v60, %v200_v61 }
  0xad   :  { %v289_v0 = vpop.f32.mrf.mxu0 }
  0xae   :  { %v257_v1 = vadd.f32 %v256_v62, %v230_v63 }
  0xb0   :  { %v290_v2 = vadd.f32 %v289_v0, %v257_v1 }
  0xb1   :  { %v314_v3 = vpop.f32.mrf.mxu1 }
  0xb2   :  { %v315_v4 = vadd.f32 %v314_v3, %v290_v2 }
  0xb4   :  { %510 = vrot.lane.b32.xlu2 %v315_v4, %s2033_s4  ;;  %541 = vrot.lane.b32.xlu1 %v315_v4, %s2034_s5 }
  0xb5   :  { %505 = vrot.lane.b32.xlu0 %v315_v4, %s2035_s11  ;;  %v343_v6 = vpop.f32.mrf.mxu2  ;;  %v384_v8 = vpop.f32.mrf.mxu3 }
  0xb6   :  { %v344_v7 = vadd.f32 %v343_v6, %v125_v5 }
  0xb8   :  { %v385_v9 = vadd.f32 %v384_v8, %v344_v7  ;;  %v414_v10 = vpop.f32.mrf.mxu0 }
  0xba   :  { %v415_v11 = vadd.f32 %v414_v10, %v385_v9  ;;  %v441_v12 = vpop.f32.mrf.mxu1  ;;  %v748_v9 = vld [vmem:[#allocation9] sm:$0xff] }
  0xbc   :  { %561 = vrot.lane.b32.xlu2 %v315_v4, %s2036_s12  ;;  %557 = vrot.lane.b32.xlu1 %v315_v4, %s2037_s13  ;;  %v442_v13 = vadd.f32 %v441_v12, %v415_v11 }
  0xbd   :  { %525 = vrot.lane.b32.xlu0 %v315_v4, %s2038_s14  ;;  %v474_v14 = vpop.f32.mrf.mxu2 }
  0xbe   :  { %v475_v15 = vadd.f32 %v474_v14, %v442_v13 }
  0xbf   :  { %v499_v16 = vpop.f32.mrf.mxu3 }
  0xc0   :  { %v500_v17 = vadd.f32 %v499_v16, %v475_v15  ;;  %v757_v15 = vsel %vm755_vm10, %v748_v9, 0  ;;  %vm1136_vm10 = vcmask 232616  }
  0xc4   :  { %533 = vrot.lane.b32.xlu2 %v315_v4, %s2039_s15  ;;  %545 = vrot.lane.b32.xlu1 %v315_v4, %s2040_s16 }
  0xc5   :  { %529 = vrot.lane.b32.xlu0 %v315_v4, %s2041_s17 }
  0xcc   :  { %553 = vrot.lane.b32.xlu2 %v315_v4, %s2042_s18  ;;  %515 = vrot.lane.b32.xlu1 %v315_v4, %s2043_s19 }
  0xcd   :  { %549 = vrot.lane.b32.xlu0 %v315_v4, %s2044_s1 }
  0xd4   :  { %638 = vrot.lane.b32.xlu2 %v315_v4, %s2045_s20  ;;  %565 = vrot.lane.b32.xlu1 %v315_v4, %s2046_s21 }
  0xd5   :  { %520 = vrot.lane.b32.xlu0 %v315_v4, %s2047_s22 }
  0xdc   :  { %672 = vrot.lane.b32.xlu2 %v315_v4, %s2048_s23  ;;  %537 = vrot.lane.b32.xlu1 %v315_v4, %s2049_s3 }
  0xdd   :  { %569 = vrot.lane.b32.xlu0 %v315_v4, %s2050_s24 }
  0xe4   :  { %656 = vrot.lane.b32.xlu2 %v315_v4, %s2051_s25  ;;  %662 = vrot.lane.b32.xlu1 %v315_v4, %s2052_s26 }
  0xe5   :  { %652 = vrot.lane.b32.xlu0 %v315_v4, %s2053_s27 }
  0xec   :  { %574 = vrot.lane.b32.xlu2 %v500_v17, %s2035_s11  ;;  %643 = vrot.lane.b32.xlu1 %v315_v4, %s2054_s0 }
  0xed   :  { %666 = vrot.lane.b32.xlu0 %v315_v4, %s2055_s28 }
  0xf4   :  { %590 = vrot.lane.b32.xlu2 %v500_v17, %s2038_s14  ;;  %676 = vrot.lane.b32.xlu1 %v315_v4, %s2056_s29 }
  0xf5   :  { %606 = vrot.lane.b32.xlu0 %v500_v17, %s2034_s5  ;;  %s2063_s5 = smov 127  }
  0xfc   :  { %610 = vrot.lane.b32.xlu2 %v500_v17, %s2040_s16  ;;  %622 = vrot.lane.b32.xlu1 %v500_v17, %s2037_s13  ;;  %s2066_s13 = smov 1   ;;  %s2070_s16 = smov 31  }
  0xfd   :  { %578 = vrot.lane.b32.xlu0 %v500_v17, %s2033_s4  ;;  %s2062_s4 = smov 116  }
 0x104   :  { %582 = vrot.lane.b32.xlu2 %v500_v17, %s2043_s19  ;;  %594 = vrot.lane.b32.xlu1 %v500_v17, %s2041_s17  ;;  %s2071_s17 = smov 21   ;;  %s2072_s19 = smov 51  }
 0x105   :  { %626 = vrot.lane.b32.xlu0 %v500_v17, %s2036_s12  ;;  %s2064_s12 = smov 126  }
 0x10c   :  { %630 = vrot.lane.b32.xlu2 %v500_v17, %s2046_s21  ;;  %614 = vrot.lane.b32.xlu1 %v500_v17, %s2044_s1  ;;  %s2073_s1 = smov 61  }
 0x10d   :  { %598 = vrot.lane.b32.xlu0 %v500_v17, %s2039_s15  ;;  %s2068_s15 = smov 2  }
 0x10e   :  { %v2257_v19 = vpop.permute.xlu2 %510 }
 0x114   :  { %602 = vrot.lane.b32.xlu2 %v500_v17, %s2049_s3  ;;  %586 = vrot.lane.b32.xlu1 %v500_v17, %s2047_s22 }
 0x115   :  { %618 = vrot.lane.b32.xlu0 %v500_v17, %s2042_s18 }
 0x116   :  { %v2262_v20 = vpop.permute.xlu2 %561 }
 0x11c   :  { %702 = vrot.lane.b32.xlu2 %v500_v17, %s2052_s26  ;;  %634 = vrot.lane.b32.xlu1 %v500_v17, %s2050_s24  ;;  %s2076_s24 = smov 68   ;;  %s2078_s26 = smov 88  }
 0x11d   :  { %682 = vrot.lane.b32.xlu0 %v500_v17, %s2045_s20 }
 0x11e   :  { %v534_v21 = vpop.permute.xlu2 %533 }
 0x124   :  { %686 = vrot.lane.b32.xlu2 %v500_v17, %s2054_s0  ;;  %692 = vrot.lane.b32.xlu1 %v500_v17, %s2053_s27  ;;  %s2079_s27 = smov 18   ;;  %s2080_s0 = smov 28  }
 0x125   :  { %712 = vrot.lane.b32.xlu0 %v500_v17, %s2048_s23 }
 0x126   :  { %v554_v22 = vpop.permute.xlu2 %553  ;;  %v542_v23 = vpop.permute.xlu1 %541 }
 0x127   :  { %544 = vst.msk [vmem:[#allocation2 + $0x2] sm:$0x1] %vm508_vm2, %v542_v23  ;;  %v506_v24 = vpop.permute.xlu0 %505 }
 0x128   :  { %509 = vst.msk [vmem:[#allocation2] sm:$0x1] %vm508_vm2, %v506_v24 }
 0x129   :  { %514 = vst.msk [vmem:[#allocation2] sm:$0x1] %vm513_vm3, %v2257_v19 }
 0x12c   :  { %716 = vrot.lane.b32.xlu2 %v500_v17, %s2056_s29  ;;  %706 = vrot.lane.b32.xlu1 %v500_v17, %s2055_s28  ;;  %s2081_s28 = smov 58   ;;  %s2082_s29 = smov 8  }
 0x12d   :  { %696 = vrot.lane.b32.xlu0 %v500_v17, %s2051_s25 }
 0x12e   :  { %v639_v25 = vpop.permute.xlu2 %638  ;;  %v558_v26 = vpop.permute.xlu1 %557 }
 0x12f   :  { %560 = vst.msk [vmem:[#allocation2 + $0x3] sm:$0x1] %vm508_vm2, %v558_v26  ;;  %v526_v27 = vpop.permute.xlu0 %525 }
 0x130   :  { %528 = vst.msk [vmem:[#allocation2 + $0x1] sm:$0x1] %vm508_vm2, %v526_v27 }
 0x131   :  { %564 = vst.msk [vmem:[#allocation2 + $0x3] sm:$0x1] %vm513_vm3, %v2262_v20 }
 0x136   :  { %v673_v28 = vpop.permute.xlu2 %672  ;;  %v546_v29 = vpop.permute.xlu1 %545 }
 0x137   :  { %548 = vst.msk [vmem:[#allocation2 + $0x2] sm:$0x1] %vm513_vm3, %v546_v29  ;;  %v530_v30 = vpop.permute.xlu0 %529 }
 0x138   :  { %532 = vst.msk [vmem:[#allocation2 + $0x1] sm:$0x1] %vm513_vm3, %v530_v30 }
 0x139   :  { %536 = vst.msk [vmem:[#allocation2 + $0x1] sm:$0x1] %vm518_vm4, %v534_v21  ;;  %v2391_v21 = vand.u32 4294901760, %v757_v15 }
 0x13e   :  { %v657_v31 = vpop.permute.xlu2 %656  ;;  %v516_v32 = vpop.permute.xlu1 %515 }
 0x13f   :  { %519 = vst.msk [vmem:[#allocation2] sm:$0x1] %vm518_vm4, %v516_v32  ;;  %v550_v33 = vpop.permute.xlu0 %549  ;;  %v2417_v32 = vsub.f32 %v757_v15, %v2391_v21 }
 0x140   :  { %552 = vst.msk [vmem:[#allocation2 + $0x2] sm:$0x1] %vm518_vm4, %v550_v33 }
 0x141   :  { %556 = vst.msk [vmem:[#allocation2 + $0x2] sm:$0x1] %vm523_vm5, %v554_v22 }
 0x146   :  { %v2286_v34 = vpop.permute.xlu2 %574  ;;  %v566_v35 = vpop.permute.xlu1 %565 }
 0x147   :  { %577 = vst.msk [vmem:[#allocation2 + $0x4] sm:$0x1] %vm508_vm2, %v2286_v34  ;;  %v521_v36 = vpop.permute.xlu0 %520 }
 0x148   :  { %568 = vst.msk [vmem:[#allocation2 + $0x3] sm:$0x1] %vm518_vm4, %v566_v35 }
 0x149   :  { %524 = vst.msk [vmem:[#allocation2] sm:$0x1] %vm523_vm5, %v521_v36 }
 0x14a   :  { %642 = vst.msk [vmem:[#allocation2 - $0x1] sm:$0x2] %vm641_vm6, %v639_v25 }
 0x14e   :  { %v2293_v37 = vpop.permute.xlu2 %590  ;;  %v538_v38 = vpop.permute.xlu1 %537 }
 0x14f   :  { %593 = vst.msk [vmem:[#allocation2 + $0x5] sm:$0x1] %vm508_vm2, %v2293_v37  ;;  %v570_v39 = vpop.permute.xlu0 %569 }
 0x150   :  { %540 = vst.msk [vmem:[#allocation2 + $0x1] sm:$0x1] %vm523_vm5, %v538_v38 }
 0x151   :  { %572 = vst.msk [vmem:[#allocation2 + $0x3] sm:$0x1] %vm523_vm5, %v570_v39 }
 0x152   :  { %675 = vst.msk [vmem:[#allocation2 + $0x2] sm:$0x2] %vm641_vm6, %v673_v28 }
 0x156   :  { %v663_v40 = vpop.permute.xlu1 %662  ;;  %v611_v42 = vpop.permute.xlu2 %610 }
 0x157   :  { %665 = vst.msk [vmem:[#allocation2 + $0x1] sm:$0x2] %vm641_vm6, %v663_v40  ;;  %v653_v41 = vpop.permute.xlu0 %652  ;;  %v786_v40 = vand.u32 4294901760, %v2417_v32 }
 0x158   :  { %655 = vst.msk [vmem:[#allocation2] sm:$0x2] %vm641_vm6, %v653_v41 }
 0x159   :  { %659 = vst.msk [vmem:[#allocation2] sm:$0x2] %vm646_vm7, %v657_v31 }
 0x15a   :  { %660 = vst.msk [vmem:[#allocation2] sm:$0x2] %vm648_vm8, %v558_v26 }
 0x15b   :  { %661 = vst.msk [vmem:[#allocation2] sm:$0x2] %vm650_vm9, %v2262_v20 }
 0x15e   :  { %v644_v43 = vpop.permute.xlu1 %643  ;;  %v583_v45 = vpop.permute.xlu2 %582 }
 0x15f   :  { %647 = vst.msk [vmem:[#allocation2 - $0x1] sm:$0x2] %vm646_vm7, %v644_v43  ;;  %v667_v44 = vpop.permute.xlu0 %666 }
 0x160   :  { %649 = vst.msk [vmem:[#allocation2 - $0x1] sm:$0x2] %vm648_vm8, %v542_v23 }
 0x161   :  { %651 = vst.msk [vmem:[#allocation2 - $0x1] sm:$0x2] %vm650_vm9, %v546_v29 }
 0x162   :  { %669 = vst.msk [vmem:[#allocation2 + $0x1] sm:$0x2] %vm646_vm7, %v667_v44 }
 0x163   :  { %670 = vst.msk [vmem:[#allocation2 + $0x1] sm:$0x2] %vm648_vm8, %v506_v24 }
 0x164   :  { %671 = vst.msk [vmem:[#allocation2 + $0x1] sm:$0x2] %vm650_vm9, %v2257_v19 }
 0x166   :  { %v677_v46 = vpop.permute.xlu1 %676  ;;  %v631_v50 = vpop.permute.xlu2 %630 }
 0x167   :  { %679 = vst.msk [vmem:[#allocation2 + $0x2] sm:$0x2] %vm646_vm7, %v677_v46  ;;  %v607_v47 = vpop.permute.xlu0 %606 }
 0x168   :  { %680 = vst.msk [vmem:[#allocation2 + $0x2] sm:$0x2] %vm648_vm8, %v526_v27 }
 0x169   :  { %681 = vst.msk [vmem:[#allocation2 + $0x2] sm:$0x2] %vm650_vm9, %v530_v30 }
 0x16a   :  { %609 = vst.msk [vmem:[#allocation2 + $0x6] sm:$0x1] %vm508_vm2, %v607_v47 }
 0x16b   :  { %613 = vst.msk [vmem:[#allocation2 + $0x6] sm:$0x1] %vm513_vm3, %v611_v42 }
 0x16e   :  { %v623_v48 = vpop.permute.xlu1 %622  ;;  %v603_v53 = vpop.permute.xlu2 %602 }
 0x16f   :  { %625 = vst.msk [vmem:[#allocation2 + $0x7] sm:$0x1] %vm508_vm2, %v623_v48  ;;  %v579_v49 = vpop.permute.xlu0 %578  ;;  %vm1093_vm2 = vcmask 150616  }
 0x170   :  { %581 = vst.msk [vmem:[#allocation2 + $0x4] sm:$0x1] %vm513_vm3, %v579_v49 }
 0x171   :  { %585 = vst.msk [vmem:[#allocation2 + $0x4] sm:$0x1] %vm518_vm4, %v583_v45 }
 0x176   :  { %v595_v51 = vpop.permute.xlu1 %594  ;;  %v703_v56 = vpop.permute.xlu2 %702 }
 0x177   :  { %597 = vst.msk [vmem:[#allocation2 + $0x5] sm:$0x1] %vm513_vm3, %v595_v51  ;;  %v627_v52 = vpop.permute.xlu0 %626 }
 0x178   :  { %629 = vst.msk [vmem:[#allocation2 + $0x7] sm:$0x1] %vm513_vm3, %v627_v52  ;;  %vm1118_vm3 = vcmask 85016  }
 0x179   :  { %633 = vst.msk [vmem:[#allocation2 + $0x7] sm:$0x1] %vm518_vm4, %v631_v50  ;;  %v2448_v50 = vld [vmem:[#allocation11] sm:$0xff] }
 0x17e   :  { %v615_v54 = vpop.permute.xlu1 %614  ;;  %v687_v59 = vpop.permute.xlu2 %686 }
 0x17f   :  { %617 = vst.msk [vmem:[#allocation2 + $0x6] sm:$0x1] %vm518_vm4, %v615_v54  ;;  %v599_v55 = vpop.permute.xlu0 %598 }
 0x180   :  { %601 = vst.msk [vmem:[#allocation2 + $0x5] sm:$0x1] %vm518_vm4, %v599_v55  ;;  %vm1123_vm4 = vcmask 249016  }
 0x181   :  { %605 = vst.msk [vmem:[#allocation2 + $0x5] sm:$0x1] %vm523_vm5, %v603_v53  ;;  %v2065_v53 = vmov 0  }
 0x182   :  { %1864 = vset.pattern.permute.xlu2 %v2065_v53  ;;  %1865 = vset.pattern.permute.xlu1 %v2065_v53 }
 0x183   :  { %1869 = vset.pattern.permute.xlu0 %v2065_v53 }
 0x186   :  { %v587_v57 = vpop.permute.xlu1 %586  ;;  %v717_v0 = vpop.permute.xlu2 %716 }
 0x187   :  { %589 = vst.msk [vmem:[#allocation2 + $0x4] sm:$0x1] %vm523_vm5, %v587_v57  ;;  %v619_v58 = vpop.permute.xlu0 %618 }
 0x188   :  { %621 = vst.msk [vmem:[#allocation2 + $0x6] sm:$0x1] %vm523_vm5, %v619_v58 }
 0x189   :  { %705 = vst.msk [vmem:[#allocation2 + $0x5] sm:$0x2] %vm641_vm6, %v703_v56 }
 0x18e   :  { %v635_v60 = vpop.permute.xlu1 %634 }
 0x18f   :  { %637 = vst.msk [vmem:[#allocation2 + $0x7] sm:$0x1] %vm523_vm5, %v635_v60  ;;  %v683_v61 = vpop.permute.xlu0 %682  ;;  %vm1098_vm5 = vcmask 314616  }
 0x190   :  { %685 = vst.msk [vmem:[#allocation2 + $0x3] sm:$0x2] %vm641_vm6, %v683_v61 }
 0x191   :  { %689 = vst.msk [vmem:[#allocation2 + $0x3] sm:$0x2] %vm646_vm7, %v687_v59 }
 0x192   :  { %690 = vst.msk [vmem:[#allocation2 + $0x3] sm:$0x2] %vm648_vm8, %v607_v47 }
 0x193   :  { %691 = vst.msk [vmem:[#allocation2 + $0x3] sm:$0x2] %vm650_vm9, %v611_v42 }
 0x196   :  { %v693_v62 = vpop.permute.xlu1 %692 }
 0x197   :  { %695 = vst.msk [vmem:[#allocation2 + $0x4] sm:$0x2] %vm641_vm6, %v693_v62  ;;  %v713_v63 = vpop.permute.xlu0 %712 }
 0x198   :  { %715 = vst.msk [vmem:[#allocation2 + $0x6] sm:$0x2] %vm641_vm6, %v713_v63  ;;  %vm1103_vm6 = vcmask 478616  }
 0x199   :  { %719 = vst.msk [vmem:[#allocation2 + $0x6] sm:$0x2] %vm646_vm7, %v717_v0 }
 0x19a   :  { %720 = vst.msk [vmem:[#allocation2 + $0x6] sm:$0x2] %vm648_vm8, %v2293_v37 }
 0x19b   :  { %721 = vst.msk [vmem:[#allocation2 + $0x6] sm:$0x2] %vm650_vm9, %v595_v51 }
 0x19e   :  { %v707_v1 = vpop.permute.xlu1 %706 }
 0x19f   :  { %709 = vst.msk [vmem:[#allocation2 + $0x5] sm:$0x2] %vm646_vm7, %v707_v1  ;;  %v697_v2 = vpop.permute.xlu0 %696 }
 0x1a0   :  { %710 = vst.msk [vmem:[#allocation2 + $0x5] sm:$0x2] %vm648_vm8, %v2286_v34 }
 0x1a1   :  { %711 = vst.msk [vmem:[#allocation2 + $0x5] sm:$0x2] %vm650_vm9, %v579_v49 }
 0x1a2   :  { %699 = vst.msk [vmem:[#allocation2 + $0x4] sm:$0x2] %vm646_vm7, %v697_v2  ;;  %vm1108_vm7 = vcmask 642616  }
 0x1a3   :  { %700 = vst.msk [vmem:[#allocation2 + $0x4] sm:$0x2] %vm648_vm8, %v623_v48  ;;  %vm1113_vm8 = vcmask 970616  }
 0x1a4   :  { %701 = vst.msk [vmem:[#allocation2 + $0x4] sm:$0x2] %vm650_vm9, %v627_v52  ;;  %v787_v52 = vsub.f32 %v2417_v32, %v786_v40  ;;  %vm1128_vm9 = vcmask 413016  }
 0x1a6   :  { %v788_v60 = vand.u32 4294901760, %v787_v52  ;;  %v2069_v52 = vmov 2  }
 0x1ab   :  { %v2348_v3 = vld [vmem:[#allocation2] sm:$0xff] }
 0x1ac   :  { %739 = vrot.lane.b32.xlu2 %v2348_v3, %s2058_s30  ;;  %742 = vrot.lane.b32.xlu1 %v2348_v3, %s2038_s14  ;;  %v2426_v36 = vand.u32 4294901760, %v2348_v3 }
 0x1ad   :  { %745 = vrot.lane.b32.xlu0 %v2348_v3, %s2059_s2 }
 0x1ae   :  { %v849_v46 = vsub.f32 %v2348_v3, %v2426_v36 }
 0x1b0   :  { %v850_v59 = vand.u32 4294901760, %v849_v46 }
 0x1b2   :  { %v851_v0 = vsub.f32 %v849_v46, %v850_v59 }
 0x1b4   :  { %730 = vrot.lane.b32.xlu2 %v2348_v3, %s2060_s9  ;;  %733 = vrot.lane.b32.xlu1 %v2348_v3, %s2061_s10  ;;  %v852_v2 = vand.u32 4294901760, %v851_v0 }
 0x1b5   :  { %736 = vrot.lane.b32.xlu0 %v2348_v3, %s2062_s4 }
 0x1bc   :  { %724 = vrot.lane.b32.xlu1 %v2348_v3, %s2063_s5  ;;  %752 = vperm.xlu2 %1864, %v2448_v50  }
 0x1bd   :  { %727 = vrot.lane.b32.xlu0 %v2348_v3, %s2064_s12 }
 0x206   :  { %v740_v4 = vpop.permute.xlu2 %739 }
 0x207   :  { %v2366_v5 = vand.u32 4294901760, %v740_v4 }
 0x209   :  { %v2371_v10 = vsub.f32 %v740_v4, %v2366_v5 }
 0x20b   :  { %v814_v17 = vand.u32 4294901760, %v2371_v10 }
 0x20d   :  { %v815_v30 = vsub.f32 %v2371_v10, %v814_v17 }
 0x20e   :  { %v731_v12 = vpop.permute.xlu2 %730 }
 0x20f   :  { %v2385_v19 = vand.u32 4294901760, %v731_v12  ;;  %v816_v39 = vand.u32 4294901760, %v815_v30 }
 0x211   :  { %v2405_v27 = vsub.f32 %v731_v12, %v2385_v19 }
 0x213   :  { %v832_v37 = vand.u32 4294901760, %v2405_v27 }
 0x215   :  { %v833_v49 = vsub.f32 %v2405_v27, %v832_v37 }
 0x216   :  { %v753_v3 = vpop.permute.xlu2 %752 }
 0x217   :  { %v834_v58 = vand.u32 4294901760, %v833_v49 }
 0x21e   :  { %v743_v6 = vpop.permute.xlu1 %742 }
 0x21f   :  { %v2368_v7 = vand.u32 4294901760, %v743_v6  ;;  %v746_v8 = vpop.permute.xlu0 %745 }
 0x220   :  { %v2373_v11 = vand.u32 4294901760, %v746_v8 }
 0x221   :  { %v2376_v13 = vsub.f32 %v743_v6, %v2368_v7 }
 0x222   :  { %v2379_v14 = vsub.f32 %v746_v8, %v2373_v11  ;;  %767 = vmatpush.msrb.mxu0 %v2373_v11  ;;  %907 = vmatpush.msrb.mxu3 %v2373_v11 }
 0x223   :  { %v808_v16 = vand.u32 4294901760, %v2376_v13 }
 0x224   :  { %v802_v20 = vand.u32 4294901760, %v2379_v14  ;;  %769 = vmatpush.msrb.mxu0 %v2368_v7  ;;  %868 = vmatpush.msrb.mxu2 %v2379_v14 }
 0x225   :  { %909 = vmatpush.msrb.mxu3 %v2368_v7  ;;  %v809_v24 = vsub.f32 %v2376_v13, %v808_v16 }
 0x226   :  { %v803_v22 = vsub.f32 %v2379_v14, %v802_v20  ;;  %771 = vmatpush.msrb.mxu0 %v2366_v5  ;;  %871 = vmatpush.msrb.mxu2 %v2376_v13  ;;  %v734_v23 = vpop.permute.xlu1 %733 }
 0x227   :  { %911 = vmatpush.msrb.mxu3 %v2366_v5  ;;  %v2402_v25 = vand.u32 4294901760, %v734_v23  ;;  %v737_v26 = vpop.permute.xlu0 %736  ;;  %v810_v34 = vand.u32 4294901760, %v809_v24 }
 0x228   :  { %v804_v28 = vand.u32 4294901760, %v803_v22  ;;  %v2407_v29 = vand.u32 4294901760, %v737_v26  ;;  %874 = vmatpush.msrb.mxu2 %v2371_v10 }
 0x229   :  { %v2414_v31 = vsub.f32 %v734_v23, %v2402_v25 }
 0x22a   :  { %v2420_v33 = vsub.f32 %v737_v26, %v2407_v29  ;;  %773 = vmatpush.msrb.mxu0 %v2407_v29  ;;  %805 = vmatpush.msrb.mxu1 %v804_v28 }
 0x22b   :  { %v826_v35 = vand.u32 4294901760, %v2414_v31  ;;  %913 = vmatpush.msrb.mxu3 %v2407_v29 }
 0x22c   :  { %v820_v38 = vand.u32 4294901760, %v2420_v33  ;;  %775 = vmatpush.msrb.mxu0 %v2402_v25  ;;  %811 = vmatpush.msrb.mxu1 %v810_v34 }
 0x22d   :  { %877 = vmatpush.msrb.mxu2 %v2420_v33  ;;  %915 = vmatpush.msrb.mxu3 %v2402_v25  ;;  %v827_v43 = vsub.f32 %v2414_v31, %v826_v35 }
 0x22e   :  { %777 = vmatpush.msrb.mxu0 %v2385_v19  ;;  %817 = vmatpush.msrb.mxu1 %v816_v39  ;;  %v725_v41 = vpop.permute.xlu1 %724  ;;  %v821_v42 = vsub.f32 %v2420_v33, %v820_v38 }
 0x22f   :  { %880 = vmatpush.msrb.mxu2 %v2414_v31  ;;  %917 = vmatpush.msrb.mxu3 %v2385_v19  ;;  %v2441_v44 = vand.u32 4294901760, %v725_v41  ;;  %v728_v45 = vpop.permute.xlu0 %727  ;;  %v828_v55 = vand.u32 4294901760, %v827_v43 }
 0x230   :  { %v778_v47 = vand.u32 4294901760, %v728_v45  ;;  %v822_v48 = vand.u32 4294901760, %v821_v42 }
 0x231   :  { %v843_v51 = vsub.f32 %v725_v41, %v2441_v44  ;;  %883 = vmatpush.msrb.mxu2 %v2405_v27 }
 0x232   :  { %v837_v54 = vsub.f32 %v728_v45, %v778_v47  ;;  %779 = vmatpush.msrb.mxu0 %v778_v47  ;;  %823 = vmatpush.msrb.mxu1 %v822_v48  ;;  %v2067_v48 = vmov 1  }
 0x233   :  { %v844_v56 = vand.u32 4294901760, %v843_v51  ;;  %919 = vmatpush.msrb.mxu3 %v778_v47 }
 0x234   :  { %v838_v57 = vand.u32 4294901760, %v837_v54  ;;  %781 = vmatpush.msrb.mxu0 %v2441_v44  ;;  %829 = vmatpush.msrb.mxu1 %v828_v55 }
 0x235   :  { %886 = vmatpush.msrb.mxu2 %v837_v54  ;;  %921 = vmatpush.msrb.mxu3 %v2441_v44  ;;  %v845_v62 = vsub.f32 %v843_v51, %v844_v56 }
 0x236   :  { %783 = vmatpush.msrb.mxu0 %v2426_v36  ;;  %835 = vmatpush.msrb.mxu1 %v834_v58  ;;  %v839_v61 = vsub.f32 %v837_v54, %v838_v57 }
 0x237   :  { %889 = vmatpush.msrb.mxu2 %v843_v51  ;;  %923 = vmatpush.msrb.mxu3 %v2426_v36  ;;  %v846_v1 = vand.u32 4294901760, %v845_v62 }
 0x238   :  { %941 = vmatpush.msra.mxu0 %v802_v20  ;;  %v840_v63 = vand.u32 4294901760, %v839_v61  ;;  %927 = vmatmul.f32.vlgmr.msrb.gmra.mxu3 %v786_v40 }
 0x239   :  { %892 = vmatpush.msrb.mxu2 %v849_v46  ;;  %789 = vmatmul.f32.vlgmr.msrb.gmra.mxu0 %v788_v60 }
 0x23a   :  { %945 = vmatpush.msra.mxu0 %v808_v16  ;;  %841 = vmatpush.msrb.mxu1 %v840_v63  ;;  %v1870_v16 = vld [vmem:[#allocation12] ss:$0 sm:$0xff] }
 0x23b   :  { %895 = vmatmul.f32.vlgmr.msrb.gmra.mxu2 %v2417_v32 }
 0x23c   :  { %949 = vmatpush.msra.mxu0 %v814_v17  ;;  %847 = vmatpush.msrb.mxu1 %v846_v1 }
 0x23e   :  { %953 = vmatpush.msra.mxu0 %v820_v38  ;;  %853 = vmatpush.msrb.mxu1 %v852_v2 }
 0x23f   :  { %855 = vmatmul.f32.vlgmr.msrb.gmra.mxu1 %v2391_v21 }
 0x240   :  { %987 = vmatpush.msra.mxu1 %v2373_v11  ;;  %957 = vmatpush.msra.mxu0 %v826_v35 }
 0x242   :  { %989 = vmatpush.msra.mxu1 %v2368_v7  ;;  %961 = vmatpush.msra.mxu0 %v832_v37 }
 0x244   :  { %991 = vmatpush.msra.mxu1 %v2366_v5  ;;  %965 = vmatpush.msra.mxu0 %v838_v57 }
 0x246   :  { %993 = vmatpush.msra.mxu1 %v2407_v29  ;;  %969 = vmatpush.msra.mxu0 %v844_v56 }
 0x248   :  { %995 = vmatpush.msra.mxu1 %v2402_v25  ;;  %973 = vmatpush.msra.mxu0 %v850_v59 }
 0x249   :  { %975 = vmatmul.f32.vlgmr.msra.gmra.mxu0 %v2391_v21 }
 0x24a   :  { %997 = vmatpush.msra.mxu1 %v2385_v19 }
 0x24c   :  { %999 = vmatpush.msra.mxu1 %v778_v47 }
 0x24e   :  { %1001 = vmatpush.msra.mxu1 %v2441_v44 }
 0x250   :  { %1003 = vmatpush.msra.mxu1 %v2426_v36 }
 0x251   :  { %1005 = vmatmul.f32.vlgmr.msra.gmra.mxu1 %v2391_v21 }
 0x2b6   :  { %v790_v4 = vpop.f32.mrf.mxu0 }
 0x2b7   :  { %v791_v5 = vadd.f32 %v790_v4, %v753_v3 }
 0x2bb   :  { %v928_v10 = vpop.f32.mrf.mxu3 }
 0x2bc   :  { %v856_v6 = vpop.f32.mrf.mxu1 }
 0x2bd   :  { %v857_v7 = vadd.f32 %v856_v6, %v791_v5 }
 0x2be   :  { %v896_v8 = vpop.f32.mrf.mxu2 }
 0x2bf   :  { %v897_v9 = vadd.f32 %v896_v8, %v857_v7 }
 0x2c1   :  { %v929_v11 = vadd.f32 %v928_v10, %v897_v9 }
 0x2c6   :  { %v976_v12 = vpop.f32.mrf.mxu0 }
 0x2c7   :  { %v977_v13 = vadd.f32 %v976_v12, %v929_v11 }
 0x2ce   :  { %v1006_v14 = vpop.f32.mrf.mxu1 }
 0x2cf   :  { %v1007_v15 = vadd.f32 %v1006_v14, %v977_v13 }
 0x2d1   :  { %v1009_v17 = vmax.f32 %v1007_v15, 0.0 }
 0x2d3   :  { %v1014_v19 = vmul.f32 %v1870_v16, %v1009_v17 }
 0x2d5   :  { %v1016_v20 = vsel %vm1015_vm11, %v1014_v19, 0.0 }
 0x2d6   :  { %1017 = vadd.xlane.f32.xlu0 %v1016_v20 }
 0x349   :  { %v1018_v21 = vpop.xlane.xlu0 %1017 }
 0x34a   :  { %v1020_v22 = vrot.slane %v1018_v21, 4 }
 0x34c   :  { %v1022_v23 = vadd.f32 %v1020_v22, %v1018_v21 }
 0x34e   :  { %v1023_v24 = vmul.f32 0.0078125, %v1022_v23 }
 0x350   :  { %v1025_v25 = vrot.slane %v1023_v24, 4 }
 0x352   :  { %v1028_v26 = vsel %vm1027_vm12, %v1023_v24, %v1025_v25 }
 0x353   :  { %1031 = vperm.xlu1 %1865, %v1028_v26  }
 0x35b   :  { %1866 = vset.pattern.permute.xlu1 %v2067_v48 }
 0x3c5   :  { %v1032_v27 = vpop.permute.xlu1 %1031 }
 0x3c6   :  { %v1034_v28 = vsub.f32 %v1009_v17, %v1032_v27 }
 0x3c8   :  { %v1035_v29 = vmul.f32 %v1870_v16, %v1034_v28 }
 0x3ca   :  { %v1036_v30 = vmul.f32 %v1035_v29, %v1035_v29 }
 0x3cc   :  { %v1037_v31 = vsel %vm1015_vm11, %v1036_v30, 0.0  ;;  %vm1144_vm11 = vcmask 396616  }
 0x3cd   :  { %1038 = vadd.xlane.f32.xlu2 %v1037_v31 }
 0x440   :  { %v1039_v32 = vpop.xlane.xlu2 %1038 }
 0x441   :  { %v1041_v33 = vrot.slane %v1039_v32, 4 }
 0x443   :  { %v1043_v34 = vadd.f32 %v1041_v33, %v1039_v32 }
 0x445   :  { %v1044_v35 = vmul.f32 0.0078125, %v1043_v34 }
 0x447   :  { %v1046_v36 = vrot.slane %v1044_v35, 4 }
 0x449   :  { %v1048_v37 = vsel %vm1027_vm12, %v1044_v35, %v1046_v36 }
 0x44a   :  { %v1049_v38 = vadd.f32 1e-05, %v1048_v37 }
 0x44c   :  { %1871 = vrsqrt.f32 %v1049_v38  ;;  %vm1056_vm14 = vweird.f32 %v1049_v38 }
 0x452   :  { %v1872_v39 = vpop.eup %1871 }
 0x453   :  { %v1051_v40 = vmul.f32 %v1872_v39, %v1049_v38  ;;  %vm1057_vm13 = vweird.f32 %v1872_v39 }
 0x454   :  { %vm1058_vm15 = vmor %vm1056_vm14, %vm1057_vm13  ;;  %vm1152_vm13 = vcmask 560616   ;;  %vm1160_vm14 = vcmask 724616  }
 0x455   :  { %v1052_v41 = vmul.f32 %v1872_v39, %v1051_v40 }
 0x457   :  { %v1053_v42 = vmul.f32 0.5, %v1052_v41 }
 0x459   :  { %v1054_v43 = vsub.f32 1.5, %v1053_v42 }
 0x45b   :  { %v1055_v44 = vmul.f32 %v1872_v39, %v1054_v43 }
 0x45d   :  { %v1059_v45 = vsel %vm1058_vm15, %v1872_v39, %v1055_v44  ;;  %vm1171_vm15 = vcmask 1044424  }
 0x45e   :  { %1061 = vrot.lane.b32.xlu1 %v1059_v45, %s2066_s13 }
 0x4d0   :  { %v1062_v46 = vpop.permute.xlu1 %1061 }
 0x4d1   :  { %v1064_v47 = vmul.f32 %v1062_v46, %v2448_v50 }
 0x4d3   :  { %1066 = vrot.lane.b32.xlu1 %v1064_v47, %s2063_s5 }
 0x545   :  { %v1067_v49 = vpop.permute.xlu1 %1066 }
 0x546   :  { %v1069_v51 = vmul.f32 %v1067_v49, %v1028_v26 }
 0x548   :  { %1071 = vrot.lane.b32.xlu1 %v1069_v51, %s2068_s15  ;;  %v1304_v51 = vld [vmem:[%s2781_s6] sm:$0x3] }
 0x550   :  { %1076 = vperm.xlu1 %1866, %v1064_v47  }
 0x558   :  { %1867 = vset.pattern.permute.xlu1 %v2069_v52 }
 0x5ba   :  { %v1072_v54 = vpop.permute.xlu1 %1071 }
 0x5bb   :  { %v1074_v55 = vsub.f32 %v2448_v50, %v1072_v54 }
 0x5bd   :  { %1082 = vperm.xlu1 %1867, %v1074_v55  }
 0x5c2   :  { %v1077_v56 = vpop.permute.xlu1 %1076 }
 0x5c3   :  { %v1079_v57 = vmul.f32 %v1077_v56, %v1009_v17 }
 0x5c5   :  { %1868 = vset.pattern.permute.xlu1 %v2065_v53 }
 0x62f   :  { %v1083_v58 = vpop.permute.xlu1 %1082 }
 0x630   :  { %v1085_v59 = vadd.f32 %v1083_v58, %v1079_v57 }
 0x632   :  { %1130 = vst.sshfl [vmem:[#allocation1] sm:$0xff pattern:$0x75316420] %v1085_v59  ;;  %1100 = vrot.lane.b32.xlu1 %v1085_v59, %s2070_s16  ;;  %1095 = vrot.lane.b32.xlu0 %v1085_v59, %s2071_s17 }
 0x633   :  { %1090 = vrot.lane.b32.xlu2 %v1085_v59, %s2035_s11  ;;  %s2074_s11 = smov 91  }
 0x639   :  { %v1132_v60 = vld [vmem:[#allocation1 + $0x1] ss:$2 sm:$0xff] }
 0x63a   :  { %1105 = vrot.lane.b32.xlu1 %v1085_v59, %s2051_s25  ;;  %1110 = vrot.lane.b32.xlu0 %v1085_v59, %s2072_s19  ;;  %1138 = vst.sshfl [vmem:[#allocation1] sm:$0xff pattern:$0x75316420] %v1085_v59 }
 0x63b   :  { %1115 = vrot.lane.b32.xlu2 %v1085_v59, %s2073_s1 }
 0x641   :  { %v1140_v50 = vld [vmem:[#allocation1 + $0x1] ss:$2 sm:$0xff] }
 0x642   :  { %1125 = vrot.lane.b32.xlu1 %v1085_v59, %s2042_s18  ;;  %1141 = vrot.lane.b32.xlu0 %v1140_v50, %s2070_s16  ;;  %1146 = vst.sshfl [vmem:[#allocation1] sm:$0xff pattern:$0x75316420] %v1085_v59 }
 0x643   :  { %1120 = vrot.lane.b32.xlu2 %v1085_v59, %s2045_s20 }
 0x649   :  { %v1148_v53 = vld [vmem:[#allocation1 + $0x1] ss:$2 sm:$0xff] }
 0x64a   :  { %1133 = vrot.lane.b32.xlu1 %v1132_v60, %s2071_s17  ;;  %1149 = vrot.lane.b32.xlu0 %v1148_v53, %s2051_s25  ;;  %1154 = vst.sshfl [vmem:[#allocation1] sm:$0xff pattern:$0x75316420] %v1085_v59  ;;  %s2077_s25 = smov 78  }
 0x651   :  { %v1156_v61 = vld [vmem:[#allocation1 + $0x1] ss:$2 sm:$0xff] }
 0x652   :  { %1157 = vrot.lane.b32.xlu2 %v1156_v61, %s2072_s19  ;;  %1162 = vst.sshfl [vmem:[#allocation1] sm:$0xff pattern:$0x75316420] %v1085_v59 }
 0x659   :  { %v1164_v62 = vld [vmem:[#allocation1 + $0x1] ss:$2 sm:$0xff] }
 0x65a   :  { %1165 = vrot.lane.b32.xlu1 %v1164_v62, %s2073_s1  ;;  %1175 = vst.sshfl [vmem:[#allocation1] sm:$0xff pattern:$0x75316420] %v1085_v59 }
 0x661   :  { %v1177_v63 = vld [vmem:[#allocation1 + $0x1] ss:$2 sm:$0xff] }
 0x662   :  { %1178 = vrot.lane.b32.xlu0 %v1177_v63, %s2045_s20  ;;  %1183 = vst.sshfl [vmem:[#allocation1] sm:$0xff pattern:$0x75316420] %v1085_v59 }
 0x669   :  { %v1185_v0 = vld [vmem:[#allocation1 + $0x1] ss:$2 sm:$0xff] }
 0x66a   :  { %1186 = vrot.lane.b32.xlu1 %v1185_v0, %s2042_s18  ;;  %1191 = vst.sshfl [vmem:[#allocation1] sm:$0xff pattern:$0x75316420] %v1085_v59 }
 0x671   :  { %v1193_v1 = vld [vmem:[#allocation1 + $0x1] ss:$2 sm:$0xff] }
 0x672   :  { %1194 = vrot.lane.b32.xlu2 %v1193_v1, %s2074_s11 }
 0x68d   :  { %v1091_v2 = vpop.permute.xlu2 %1090 }
 0x68e   :  { %1094 = vst.msk [vmem:[#allocation3] sm:$0xf] %vm1093_vm2, %v1091_v2  ;;  %vm1173_vm2 = vmor %vm1172_vm0, %vm1171_vm15  ;;  %vm1214_vm15 = vcmask 1039360   ;;  %vm1746_vm0 = vcmask 58369  }
 0x695   :  { %v1116_v3 = vpop.permute.xlu2 %1115 }
 0x696   :  { %1119 = vst.msk [vmem:[#allocation3 + $0x4] sm:$0xf] %vm1118_vm3, %v1116_v3  ;;  %vm1181_vm3 = vcmask 167016  }
 0x69d   :  { %v1121_v18 = vpop.permute.xlu2 %1120 }
 0x69e   :  { %1124 = vst.msk [vmem:[#allocation3 + $0x4] sm:$0xf] %vm1123_vm4, %v1121_v18  ;;  %vm1189_vm4 = vcmask 331016  }
 0x6a4   :  { %v1101_v4 = vpop.permute.xlu1 %1100  ;;  %v1096_v5 = vpop.permute.xlu0 %1095 }
 0x6a5   :  { %1099 = vst.msk [vmem:[#allocation3] sm:$0xf] %vm1098_vm5, %v1096_v5  ;;  %vm1197_vm5 = vcmask 495016  }
 0x6a6   :  { %1104 = vst.msk [vmem:[#allocation3] sm:$0xf] %vm1103_vm6, %v1101_v4  ;;  %vm1283_vm6 = vcmask 875520  }
 0x6ac   :  { %v1106_v6 = vpop.permute.xlu1 %1105  ;;  %v1111_v7 = vpop.permute.xlu0 %1110 }
 0x6ad   :  { %1109 = vst.msk [vmem:[#allocation3] sm:$0xf] %vm1108_vm7, %v1106_v6  ;;  %v1158_v12 = vpop.permute.xlu2 %1157  ;;  %vm1260_vm7 = vcmask 949248  }
 0x6ae   :  { %1114 = vst.msk [vmem:[#allocation3] sm:$0xf] %vm1113_vm8, %v1111_v7  ;;  %vm1271_vm8 = vcmask 883712  }
 0x6b4   :  { %v1126_v8 = vpop.permute.xlu1 %1125  ;;  %v1142_v9 = vpop.permute.xlu0 %1141 }
 0x6b5   :  { %1129 = vst.msk [vmem:[#allocation3 + $0x4] sm:$0xf] %vm1128_vm9, %v1126_v8  ;;  %vm1311_vm9 = vcmask 293888  }
 0x6b6   :  { %v1313_v56 = vsel %vm1311_vm9, %v1304_v51, 0 }
 0x6b7   :  { %v2536_v60 = vand.u32 4294901760, %v1313_v56 }
 0x6b9   :  { %v2543_v0 = vsub.f32 %v1313_v56, %v2536_v60 }
 0x6bb   :  { %v2558_v5 = vand.u32 4294901760, %v2543_v0 }
 0x6bc   :  { %v1134_v10 = vpop.permute.xlu1 %1133  ;;  %v1150_v11 = vpop.permute.xlu0 %1149 }
 0x6bd   :  { %1137 = vst.msk [vmem:[#allocation3] sm:$0xf] %vm1136_vm10, %v1134_v10  ;;  %vm1248_vm10 = vcmask 957440  }
 0x6be   :  { %1145 = vst.msk [vmem:[#allocation3] sm:$0xf] %vm1144_vm11, %v1142_v9  ;;  %vm1294_vm11 = vcmask 867328  }
 0x6bf   :  { %1153 = vst.msk [vmem:[#allocation3] sm:$0xf] %vm1152_vm13, %v1150_v11  ;;  %vm1225_vm13 = vcmask 1031168  }
 0x6c0   :  { %1161 = vst.msk [vmem:[#allocation3] sm:$0xf] %vm1160_vm14, %v1158_v12  ;;  %vm1237_vm14 = vcmask 965632  }
 0x6cc   :  { %v1166_v13 = vpop.permute.xlu1 %1165  ;;  %v1195_v19 = vpop.permute.xlu2 %1194 }
 0x6cd   :  { %v1167_v14 = vrot.slane %v1166_v13, 4 }
 0x6cf   :  { %v1169_v15 = vsel %vm1168_vm1, %v1167_v14, %v1166_v13 }
 0x6d0   :  { %1174 = vst.msk [vmem:[#allocation3] sm:$0xff] %vm1173_vm2, %v1169_v15 }
 0x6d4   :  { %v1179_v16 = vpop.permute.xlu0 %1178 }
 0x6d5   :  { %1182 = vst.msk [vmem:[#allocation3 + $0x4] sm:$0xf] %vm1181_vm3, %v1179_v16  ;;  %v1343_v16 = vsub.f32 %v2543_v0, %v2558_v5 }
 0x6dc   :  { %v1187_v17 = vpop.permute.xlu1 %1186 }
 0x6dd   :  { %1190 = vst.msk [vmem:[#allocation3 + $0x4] sm:$0xf] %vm1189_vm4, %v1187_v17  ;;  %v1305_v17 = vld [vmem:[%s2782_s7] sm:$0x3]  ;;  %s2075_s7 = smov 98  }
 0x6de   :  { %1198 = vst.msk [vmem:[#allocation3 + $0x4] sm:$0xf] %vm1197_vm5, %v1195_v19 }
 0x6e5   :  { %v1199_v20 = vld [vmem:[#allocation3] sm:$0xff] }
 0x6e6   :  { %1201 = vst [vmem:[#allocation1] ss:$2 sm:$0xff] %v1199_v20 }
 0x6ed   :  { %v2500_v21 = vld.sshfl [vmem:[#allocation1] sm:$0xff pattern:$0x75316420]  ;;  %v2502_v22 = vld.sshfl [vmem:[#allocation1 + $0x8] sm:$0xff pattern:$0x75316420] }
 0x6ee   :  { %1207 = vst [vmem:[#allocation1 + $0x1] ss:$2 sm:$0xff] %v1199_v20 }
 0x6f5   :  { %v1208_v23 = vld.sshfl [vmem:[#allocation1] sm:$0xff pattern:$0x75316420]  ;;  %v1209_v24 = vld.sshfl [vmem:[#allocation1 + $0x8] sm:$0xff pattern:$0x75316420] }
 0x6f6   :  { %1218 = vst [vmem:[#allocation1] ss:$2 sm:$0xff] %v1199_v20 }
 0x6fd   :  { %v1220_v25 = vld.sshfl [vmem:[#allocation1 + $0x8] sm:$0xff pattern:$0x75316420]  ;;  %v1219_v26 = vld.sshfl [vmem:[#allocation1] sm:$0xff pattern:$0x75316420] }
 0x6fe   :  { %1223 = vrot.lane.b32.xlu2 %v1220_v25, %s2064_s12  ;;  %1221 = vrot.lane.b32.xlu1 %v1219_v26, %s2064_s12  ;;  %1230 = vst [vmem:[#allocation1 + $0x1] ss:$2 sm:$0xff] %v1199_v20 }
 0x705   :  { %v1231_v27 = vld.sshfl [vmem:[#allocation1] sm:$0xff pattern:$0x75316420]  ;;  %v1232_v28 = vld.sshfl [vmem:[#allocation1 + $0x8] sm:$0xff pattern:$0x75316420] }
 0x706   :  { %1233 = vrot.lane.b32.xlu0 %v1231_v27, %s2060_s9  ;;  %1241 = vst [vmem:[#allocation1] ss:$2 sm:$0xff] %v1199_v20 }
 0x70d   :  { %v1243_v29 = vld.sshfl [vmem:[#allocation1 + $0x8] sm:$0xff pattern:$0x75316420]  ;;  %v1242_v30 = vld.sshfl [vmem:[#allocation1] sm:$0xff pattern:$0x75316420] }
 0x70e   :  { %1246 = vrot.lane.b32.xlu1 %v1243_v29, %s2061_s10  ;;  %1244 = vrot.lane.b32.xlu0 %v1242_v30, %s2061_s10  ;;  %1253 = vst [vmem:[#allocation1 + $0x1] ss:$2 sm:$0xff] %v1199_v20 }
 0x715   :  { %v1255_v31 = vld.sshfl [vmem:[#allocation1 + $0x8] sm:$0xff pattern:$0x75316420]  ;;  %v1254_v32 = vld.sshfl [vmem:[#allocation1] sm:$0xff pattern:$0x75316420] }
 0x716   :  { %1258 = vrot.lane.b32.xlu0 %v1255_v31, %s2062_s4  ;;  %1256 = vrot.lane.b32.xlu2 %v1254_v32, %s2062_s4  ;;  %1264 = vst [vmem:[#allocation1] ss:$2 sm:$0xff] %v1199_v20  ;;  %v2588_v31 = vand.u32 4294901760, %v1343_v16 }
 0x71d   :  { %v1266_v33 = vld.sshfl [vmem:[#allocation1 + $0x8] sm:$0xff pattern:$0x75316420]  ;;  %v1265_v34 = vld.sshfl [vmem:[#allocation1] sm:$0xff pattern:$0x75316420] }
 0x71e   :  { %1269 = vrot.lane.b32.xlu0 %v1266_v33, %s2058_s30  ;;  %1267 = vrot.lane.b32.xlu2 %v1265_v34, %s2058_s30  ;;  %1276 = vst [vmem:[#allocation1 + $0x1] ss:$2 sm:$0xff] %v1199_v20 }
 0x725   :  { %v1278_v35 = vld.sshfl [vmem:[#allocation1 + $0x8] sm:$0xff pattern:$0x75316420]  ;;  %v1277_v36 = vld.sshfl [vmem:[#allocation1] sm:$0xff pattern:$0x75316420] }
 0x726   :  { %1281 = vrot.lane.b32.xlu2 %v1278_v35, %s2038_s14  ;;  %1279 = vrot.lane.b32.xlu1 %v1277_v36, %s2038_s14  ;;  %1287 = vst [vmem:[#allocation1] ss:$2 sm:$0xff] %v1199_v20 }
 0x72d   :  { %v1289_v37 = vld.sshfl [vmem:[#allocation1 + $0x8] sm:$0xff pattern:$0x75316420]  ;;  %v1288_v38 = vld.sshfl [vmem:[#allocation1] sm:$0xff pattern:$0x75316420] }
 0x72e   :  { %1210 = vrot.lane.b32.xlu2 %v1208_v23, %s2063_s5  ;;  %1292 = vrot.lane.b32.xlu1 %v1289_v37, %s2059_s2 }
 0x72f   :  { %1290 = vrot.lane.b32.xlu0 %v1288_v38, %s2059_s2 }
 0x736   :  { %1235 = vrot.lane.b32.xlu1 %v1232_v28, %s2060_s9 }
 0x737   :  { %1212 = vrot.lane.b32.xlu0 %v1209_v24, %s2063_s5 }
 0x73e   :  { %1308 = vperm.xlu1 %1868, %v1305_v17  }
 0x758   :  { %v2520_v40 = vpop.permute.xlu2 %1223 }
 0x770   :  { %v1257_v41 = vpop.permute.xlu2 %1256  ;;  %v1222_v43 = vpop.permute.xlu1 %1221 }
 0x771   :  { %v1226_v9 = vsel %vm1225_vm13, %v1222_v43, %v2520_v40 }
 0x778   :  { %v1234_v39 = vpop.permute.xlu0 %1233  ;;  %v1268_v44 = vpop.permute.xlu2 %1267 }
 0x780   :  { %v1245_v42 = vpop.permute.xlu0 %1244  ;;  %v2524_v46 = vpop.permute.xlu1 %1246 }
 0x781   :  { %v2526_v47 = vpop.permute.xlu2 %1281  ;;  %v1249_v58 = vsel %vm1248_vm10, %v1245_v42, %v2524_v46 }
 0x788   :  { %v2522_v45 = vpop.permute.xlu0 %1258 }
 0x789   :  { %v1261_v54 = vsel %vm1260_vm7, %v1257_v41, %v2522_v45  ;;  %v1211_v10 = vpop.permute.xlu2 %1210  ;;  %v1301_v36 = vsel %vm1027_vm12, %v2524_v46, %v2522_v45 }
 0x78a   :  { %v1300_v59 = vsel %vm1027_vm12, %v1249_v58, %v1261_v54  ;;  %v2605_v45 = vand.u32 4294901760, %v1301_v36 }
 0x78b   :  { %v2540_v61 = vand.u32 4294901760, %v1300_v59 }
 0x78d   :  { %v2552_v18 = vsub.f32 %v1300_v59, %v2540_v61 }
 0x78f   :  { %v1374_v13 = vand.u32 4294901760, %v2552_v18 }
 0x790   :  { %v1270_v48 = vpop.permute.xlu0 %1269 }
 0x791   :  { %v1272_v55 = vsel %vm1271_vm8, %v1268_v44, %v1270_v48  ;;  %v1303_v29 = vsel %vm1027_vm12, %v1270_v48, %v2526_v47 }
 0x792   :  { %v2597_v37 = vand.u32 4294901760, %v1303_v29 }
 0x794   :  { %v1565_v46 = vsub.f32 %v1303_v29, %v2597_v37 }
 0x796   :  { %v1566_v54 = vand.u32 4294901760, %v1565_v46 }
 0x798   :  { %v1280_v49 = vpop.permute.xlu1 %1279  ;;  %v1567_v58 = vsub.f32 %v1565_v46, %v1566_v54 }
 0x799   :  { %v1284_v52 = vsel %vm1283_vm6, %v1280_v49, %v2526_v47  ;;  %v1571_v49 = vsub.f32 %v1301_v36, %v2605_v45 }
 0x79a   :  { %v1302_v57 = vsel %vm1027_vm12, %v1272_v55, %v1284_v52 }
 0x79b   :  { %v2538_v50 = vand.u32 4294901760, %v1302_v57 }
 0x79d   :  { %v2546_v1 = vsub.f32 %v1302_v57, %v2538_v50  ;;  %v1572_v57 = vand.u32 4294901760, %v1571_v49 }
 0x79f   :  { %v1368_v6 = vand.u32 4294901760, %v2546_v1 }
 0x7a0   :  { %v1293_v53 = vpop.permute.xlu1 %1292 }
 0x7a1   :  { %v1291_v62 = vpop.permute.xlu0 %1290  ;;  %v1369_v24 = vsub.f32 %v2546_v1, %v1368_v6  ;;  %v1317_v25 = vsel %vm1027_vm12, %v1293_v53, 0 }
 0x7a2   :  { %v1295_v63 = vsel %vm1294_vm11, %v1291_v62, %v1293_v53  ;;  %v2590_v32 = vand.u32 4294901760, %v1317_v25  ;;  %v1573_v53 = vsub.f32 %v1571_v49, %v1572_v57 }
 0x7a3   :  { %v1315_v2 = vsel %vm1027_vm12, %v1295_v63, 0  ;;  %v1370_v33 = vand.u32 4294901760, %v1369_v24 }
 0x7a4   :  { %v2549_v3 = vand.u32 4294901760, %v1315_v2  ;;  %v1559_v42 = vsub.f32 %v1317_v25, %v2590_v32 }
 0x7a6   :  { %v1361_v4 = vsub.f32 %v1315_v2, %v2549_v3  ;;  %1331 = vmatpush.msra.mxu2 %v2549_v3  ;;  %1503 = vmatpush.msrb.mxu1 %v2549_v3 }
 0x7a8   :  { %1333 = vmatpush.msra.mxu2 %v2538_v50  ;;  %1505 = vmatpush.msrb.mxu1 %v2538_v50  ;;  %v1236_v7 = vpop.permute.xlu1 %1235  ;;  %v1362_v8 = vand.u32 4294901760, %v1361_v4 }
 0x7a9   :  { %v1238_v11 = vsel %vm1237_vm14, %v1234_v39, %v1236_v7  ;;  %v1213_v12 = vpop.permute.xlu0 %1212  ;;  %v1299_v43 = vsel %vm1027_vm12, %v2520_v40, %v1236_v7 }
 0x7aa   :  { %v1298_v14 = vsel %vm1027_vm12, %v1226_v9, %v1238_v11  ;;  %v1215_v15 = vsel %vm1214_vm15, %v1211_v10, %v1213_v12  ;;  %1335 = vmatpush.msra.mxu2 %v2540_v61  ;;  %1469 = vmatpush.msrb.mxu0 %v1362_v8  ;;  %v1363_v23 = vsub.f32 %v1361_v4, %v1362_v8  ;;  %v2612_v48 = vand.u32 4294901760, %v1299_v43 }
 0x7ab   :  { %v2572_v19 = vand.u32 4294901760, %v1298_v14  ;;  %v1296_v20 = vsel %vm1027_vm12, %v2500_v21, %v1215_v15  ;;  %1507 = vmatpush.msrb.mxu1 %v2540_v61  ;;  %v1375_v21 = vsub.f32 %v2552_v18, %v1374_v13  ;;  %v1297_v47 = vsel %vm1027_vm12, %v2502_v22, %v1213_v12 }
 0x7ac   :  { %v2579_v26 = vand.u32 4294901760, %v1296_v20  ;;  %1473 = vmatpush.msrb.mxu0 %v1368_v6  ;;  %v1364_v28 = vand.u32 4294901760, %v1363_v23  ;;  %v1536_v51 = vand.u32 4294901760, %v1297_v47  ;;  %v1560_v22 = vand.u32 4294901760, %v1559_v42 }
 0x7ad   :  { %v1379_v27 = vsub.f32 %v1298_v14, %v2572_v19  ;;  %1337 = vmatpush.msra.mxu2 %v2572_v19  ;;  %1509 = vmatpush.msrb.mxu1 %v2572_v19  ;;  %v1376_v38 = vand.u32 4294901760, %v1375_v21  ;;  %v1577_v52 = vsub.f32 %v1299_v43, %v2612_v48  ;;  %vm1715_vm12 = vcmask 57344  }
 0x7ae   :  { %v1385_v30 = vsub.f32 %v1296_v20, %v2579_v26  ;;  %1477 = vmatpush.msrb.mxu0 %v1374_v13  ;;  %1365 = vmatpush.msra.mxu3 %v1364_v28  ;;  %v1583_v55 = vsub.f32 %v1297_v47, %v1536_v51  ;;  %v1561_v56 = vsub.f32 %v1559_v42, %v1560_v22 }
 0x7af   :  { %1339 = vmatpush.msra.mxu2 %v2579_v26  ;;  %v1380_v34 = vand.u32 4294901760, %v1379_v27  ;;  %1511 = vmatpush.msrb.mxu1 %v2579_v26  ;;  %v1578_v59 = vand.u32 4294901760, %v1577_v52 }
 0x7b0   :  { %v1386_v35 = vand.u32 4294901760, %v1385_v30  ;;  %1371 = vmatpush.msra.mxu3 %v1370_v33  ;;  %1345 = vmatmul.f32.vlgmr.msra.gmra.mxu2 %v2588_v31  ;;  %v1584_v62 = vand.u32 4294901760, %v1583_v55 }
 0x7b1   :  { %1408 = vmatpush.msrb.mxu2 %v1361_v4  ;;  %1637 = vmatpush.msra.mxu1 %v2590_v32  ;;  %v1381_v39 = vsub.f32 %v1379_v27, %v1380_v34  ;;  %v1579_v63 = vsub.f32 %v1577_v52, %v1578_v59  ;;  %v1309_v4 = vpop.permute.xlu1 %1308 }
 0x7b2   :  { %1481 = vmatpush.msrb.mxu0 %v1380_v34  ;;  %v1387_v41 = vsub.f32 %v1385_v30, %v1386_v35  ;;  %1377 = vmatpush.msra.mxu3 %v1376_v38  ;;  %v1585_v2 = vsub.f32 %v1583_v55, %v1584_v62 }
 0x7b3   :  { %1411 = vmatpush.msrb.mxu2 %v2546_v1  ;;  %v1382_v44 = vand.u32 4294901760, %v1381_v39  ;;  %1639 = vmatpush.msra.mxu1 %v2597_v37  ;;  %v1574_v1 = vand.u32 4294901760, %v1573_v53 }
 0x7b4   :  { %1485 = vmatpush.msrb.mxu0 %v1386_v35  ;;  %v1388_v40 = vand.u32 4294901760, %v1387_v41  ;;  %1513 = vmatmul.f32.vlgmr.msrb.gmra.mxu1 %v2536_v60 }
 0x7b5   :  { %1414 = vmatpush.msrb.mxu2 %v2552_v18  ;;  %1641 = vmatpush.msra.mxu1 %v2605_v45  ;;  %v1586_v18 = vand.u32 4294901760, %v1585_v2 }
 0x7b6   :  { %1606 = vmatpush.msra.mxu0 %v1559_v42  ;;  %1383 = vmatpush.msra.mxu3 %v1382_v44 }
 0x7b7   :  { %1417 = vmatpush.msrb.mxu2 %v1379_v27  ;;  %1643 = vmatpush.msra.mxu1 %v2612_v48 }
 0x7b8   :  { %1609 = vmatpush.msra.mxu0 %v1565_v46  ;;  %1389 = vmatpush.msra.mxu3 %v1388_v40 }
 0x7b9   :  { %1420 = vmatpush.msrb.mxu2 %v1385_v30  ;;  %1645 = vmatpush.msra.mxu1 %v1536_v51 }
 0x7ba   :  { %1439 = vmatpush.msrb.mxu3 %v2549_v3  ;;  %1612 = vmatpush.msra.mxu0 %v1571_v49  ;;  %v1580_v3 = vand.u32 4294901760, %v1579_v63 }
 0x7bb   :  { %1391 = vmatmul.f32.vlgmr.msra.gmra.mxu3 %v2536_v60  ;;  %1529 = vmatpush.msra.mxu2 %v2590_v32 }
 0x7bc   :  { %1423 = vmatmul.f32.vlgmr.msrb.gmra.mxu2 %v2543_v0  ;;  %1441 = vmatpush.msrb.mxu3 %v2538_v50  ;;  %v1562_v50 = vand.u32 4294901760, %v1561_v56 }
 0x7bd   :  { %1615 = vmatpush.msra.mxu0 %v1577_v52  ;;  %1531 = vmatpush.msra.mxu2 %v2597_v37 }
 0x7be   :  { %1443 = vmatpush.msrb.mxu3 %v2540_v61  ;;  %1487 = vmatmul.f32.vlgmr.msrb.gmra.mxu0 %v2536_v60  ;;  %v1568_v61 = vand.u32 4294901760, %v1567_v58 }
 0x7bf   :  { %1618 = vmatpush.msra.mxu0 %v1583_v55  ;;  %1533 = vmatpush.msra.mxu2 %v2605_v45 }
 0x7c0   :  { %1445 = vmatpush.msrb.mxu3 %v2572_v19  ;;  %1649 = vmatmul.f32.vlgmr.msra.gmra.mxu1 %v2558_v5 }
 0x7c1   :  { %1535 = vmatpush.msra.mxu2 %v2612_v48 }
 0x7c2   :  { %1447 = vmatpush.msrb.mxu3 %v2579_v26 }
 0x7c3   :  { %1451 = vmatmul.f32.vlgmr.msrb.gmra.mxu3 %v2558_v5  ;;  %1537 = vmatpush.msra.mxu2 %v1536_v51 }
 0x7c4   :  { %1563 = vmatpush.msra.mxu3 %v1562_v50  ;;  %1543 = vmatmul.f32.vlgmr.msra.gmra.mxu2 %v2588_v31 }
 0x7c5   :  { %1667 = vmatpush.msrb.mxu2 %v1560_v22 }
 0x7c6   :  { %1569 = vmatpush.msra.mxu3 %v1568_v61  ;;  %1621 = vmatmul.f32.vlgmr.msra.gmra.mxu0 %v2543_v0 }
 0x7c7   :  { %1671 = vmatpush.msrb.mxu2 %v1566_v54 }
 0x7c8   :  { %1575 = vmatpush.msra.mxu3 %v1574_v1 }
 0x7c9   :  { %1675 = vmatpush.msrb.mxu2 %v1572_v57 }
 0x7ca   :  { %1581 = vmatpush.msra.mxu3 %v1580_v3 }
 0x7cb   :  { %1679 = vmatpush.msrb.mxu2 %v1578_v59 }
 0x7cc   :  { %1587 = vmatpush.msra.mxu3 %v1586_v18 }
 0x7cd   :  { %1589 = vmatmul.f32.vlgmr.msra.gmra.mxu3 %v2536_v60  ;;  %1683 = vmatpush.msrb.mxu2 %v1584_v62 }
 0x7ce   :  { %1701 = vmatpush.msrb.mxu3 %v2590_v32  ;;  %1685 = vmatmul.f32.vlgmr.msrb.gmra.mxu2 %v2536_v60 }
 0x7d0   :  { %1703 = vmatpush.msrb.mxu3 %v2597_v37 }
 0x7d2   :  { %1705 = vmatpush.msrb.mxu3 %v2605_v45 }
 0x7d4   :  { %1707 = vmatpush.msrb.mxu3 %v2612_v48 }
 0x7d6   :  { %1709 = vmatpush.msrb.mxu3 %v1536_v51 }
 0x7d7   :  { %1711 = vmatmul.f32.vlgmr.msrb.gmra.mxu3 %v2536_v60 }
 0x831   :  { %v1514_v13 = vpop.f32.mrf.mxu1 }
 0x833   :  { %v1346_v0 = vpop.f32.mrf.mxu2 }
 0x834   :  { %v1347_v5 = vadd.f32 %v1346_v0, %v1309_v4 }
 0x83b   :  { %v1488_v11 = vpop.f32.mrf.mxu0 }
 0x83d   :  { %v1650_v24 = vpop.f32.mrf.mxu1 }
 0x83e   :  { %v1392_v6 = vpop.f32.mrf.mxu3 }
 0x83f   :  { %v1393_v7 = vadd.f32 %v1392_v6, %v1347_v5  ;;  %v1424_v8 = vpop.f32.mrf.mxu2 }
 0x841   :  { %v1425_v9 = vadd.f32 %v1424_v8, %v1393_v7 }
 0x843   :  { %v1622_v20 = vpop.f32.mrf.mxu0 }
 0x846   :  { %v1452_v10 = vpop.f32.mrf.mxu3 }
 0x847   :  { %v1453_v12 = vadd.f32 %v1452_v10, %v1425_v9  ;;  %v1544_v60 = vpop.f32.mrf.mxu2 }
 0x848   :  { %v1545_v17 = vadd.f32 %v1544_v60, %v1309_v4 }
 0x849   :  { %v1489_v14 = vadd.f32 %v1488_v11, %v1453_v12 }
 0x84b   :  { %v1515_v15 = vadd.f32 %v1514_v13, %v1489_v14 }
 0x84d   :  { %1726 = vrot.lane.b32.xlu1 %v1515_v15, %s2075_s7  ;;  %1722 = vrot.lane.b32.xlu0 %v1515_v15, %s2058_s30  ;;  %1716 = vst.msk [vmem:[%s2783_s8] sm:$0x1] %vm1715_vm12, %v1515_v15  ;;  %s2083_s30 = smov 86  }
 0x84e   :  { %1718 = vrot.lane.b32.xlu2 %v1515_v15, %s2060_s9  ;;  %1747 = vst.msk [vmem:[%s2783_s8] sm:$0x2] %vm1746_vm0, %v1515_v15  ;;  %s2084_s9 = smov 96  }
 0x850   :  { %v1590_v16 = vpop.f32.mrf.mxu3 }
 0x851   :  { %v1591_v19 = vadd.f32 %v1590_v16, %v1545_v17  ;;  %v1686_v26 = vpop.f32.mrf.mxu2 }
 0x853   :  { %v1623_v23 = vadd.f32 %v1622_v20, %v1591_v19 }
 0x855   :  { %1738 = vrot.lane.b32.xlu1 %v1515_v15, %s2076_s24  ;;  %1734 = vrot.lane.b32.xlu0 %v1515_v15, %s2077_s25  ;;  %v1651_v25 = vadd.f32 %v1650_v24, %v1623_v23 }
 0x856   :  { %1730 = vrot.lane.b32.xlu2 %v1515_v15, %s2078_s26 }
 0x857   :  { %v1687_v27 = vadd.f32 %v1686_v26, %v1651_v25 }
 0x85a   :  { %v1712_v28 = vpop.f32.mrf.mxu3 }
 0x85b   :  { %v1713_v21 = vadd.f32 %v1712_v28, %v1687_v27 }
 0x85d   :  { %1759 = vrot.lane.b32.xlu1 %v1515_v15, %s2079_s27  ;;  %1755 = vrot.lane.b32.xlu0 %v1515_v15, %s2080_s0 }
 0x85e   :  { %1742 = vrot.lane.b32.xlu2 %v1515_v15, %s2081_s28 }
 0x865   :  { %1772 = vrot.lane.b32.xlu1 %v1713_v21, %s2062_s4  ;;  %1768 = vrot.lane.b32.xlu0 %v1713_v21, %s2064_s12 }
 0x866   :  { %1763 = vrot.lane.b32.xlu2 %v1515_v15, %s2082_s29 }
 0x86d   :  { %1784 = vrot.lane.b32.xlu1 %v1713_v21, %s2083_s30  ;;  %1780 = vrot.lane.b32.xlu0 %v1713_v21, %s2084_s9 }
 0x86e   :  { %1776 = vrot.lane.b32.xlu2 %v1713_v21, %s2059_s2 }
 0x8a8   :  { %v1719_v29 = vpop.permute.xlu2 %1718 }
 0x8a9   :  { %1721 = vst.msk [vmem:[%s2783_s8 + $0x2] sm:$0x1] %vm1715_vm12, %v1719_v29 }
 0x8aa   :  { %1748 = vst.msk [vmem:[%s2783_s8 + $0x2] sm:$0x2] %vm1746_vm0, %v1719_v29 }
 0x8b0   :  { %v1731_v30 = vpop.permute.xlu2 %1730 }
 0x8b1   :  { %1733 = vst.msk [vmem:[%s2783_s8 + $0x8] sm:$0x1] %vm1715_vm12, %v1731_v30 }
 0x8b2   :  { %1751 = vst.msk [vmem:[%s2783_s8 + $0x8] sm:$0x2] %vm1746_vm0, %v1731_v30 }
 0x8b8   :  { %v1743_v31 = vpop.permute.xlu2 %1742 }
 0x8b9   :  { %1745 = vst.msk [vmem:[%s2783_s8 + $0xe] sm:$0x1] %vm1715_vm12, %v1743_v31 }
 0x8ba   :  { %1754 = vst.msk [vmem:[%s2783_s8 + $0xe] sm:$0x2] %vm1746_vm0, %v1743_v31 }
 0x8bf   :  { %v1727_v32 = vpop.permute.xlu1 %1726  ;;  %v1723_v33 = vpop.permute.xlu0 %1722 }
 0x8c0   :  { %1729 = vst.msk [vmem:[%s2783_s8 + $0x6] sm:$0x1] %vm1715_vm12, %v1727_v32  ;;  %v1764_v34 = vpop.permute.xlu2 %1763 }
 0x8c1   :  { %1750 = vst.msk [vmem:[%s2783_s8 + $0x6] sm:$0x2] %vm1746_vm0, %v1727_v32 }
 0x8c2   :  { %1725 = vst.msk [vmem:[%s2783_s8 + $0x4] sm:$0x1] %vm1715_vm12, %v1723_v33 }
 0x8c3   :  { %1749 = vst.msk [vmem:[%s2783_s8 + $0x4] sm:$0x2] %vm1746_vm0, %v1723_v33 }
 0x8c4   :  { %1766 = vst.msk [vmem:[%s2783_s8 + $0x14] sm:$0x1] %vm1715_vm12, %v1764_v34 }
 0x8c5   :  { %1790 = vst.msk [vmem:[%s2783_s8 + $0x14] sm:$0x2] %vm1746_vm0, %v1764_v34 }
 0x8c7   :  { %v1739_v35 = vpop.permute.xlu1 %1738  ;;  %v1735_v36 = vpop.permute.xlu0 %1734 }
 0x8c8   :  { %1741 = vst.msk [vmem:[%s2783_s8 + $0xc] sm:$0x1] %vm1715_vm12, %v1739_v35  ;;  %v1777_v37 = vpop.permute.xlu2 %1776 }
 0x8c9   :  { %1753 = vst.msk [vmem:[%s2783_s8 + $0xc] sm:$0x2] %vm1746_vm0, %v1739_v35 }
 0x8ca   :  { %1737 = vst.msk [vmem:[%s2783_s8 + $0xa] sm:$0x1] %vm1715_vm12, %v1735_v36 }
 0x8cb   :  { %1752 = vst.msk [vmem:[%s2783_s8 + $0xa] sm:$0x2] %vm1746_vm0, %v1735_v36 }
 0x8cc   :  { %1779 = vst.msk [vmem:[%s2783_s8 + $0x1a] sm:$0x1] %vm1715_vm12, %v1777_v37 }
 0x8cd   :  { %1793 = vst.msk [vmem:[%s2783_s8 + $0x1a] sm:$0x2] %vm1746_vm0, %v1777_v37 }
 0x8cf   :  { %v1760_v38 = vpop.permute.xlu1 %1759  ;;  %v1756_v39 = vpop.permute.xlu0 %1755 }
 0x8d0   :  { %1762 = vst.msk [vmem:[%s2783_s8 + $0x12] sm:$0x1] %vm1715_vm12, %v1760_v38 }
 0x8d1   :  { %1789 = vst.msk [vmem:[%s2783_s8 + $0x12] sm:$0x2] %vm1746_vm0, %v1760_v38 }
 0x8d2   :  { %1758 = vst.msk [vmem:[%s2783_s8 + $0x10] sm:$0x1] %vm1715_vm12, %v1756_v39 }
 0x8d3   :  { %1788 = vst.msk [vmem:[%s2783_s8 + $0x10] sm:$0x2] %vm1746_vm0, %v1756_v39 }
 0x8d7   :  { %v1773_v41 = vpop.permute.xlu1 %1772  ;;  %v1769_v42 = vpop.permute.xlu0 %1768 }
 0x8d8   :  { %1775 = vst.msk [vmem:[%s2783_s8 + $0x18] sm:$0x1] %vm1715_vm12, %v1773_v41 }
 0x8d9   :  { %1792 = vst.msk [vmem:[%s2783_s8 + $0x18] sm:$0x2] %vm1746_vm0, %v1773_v41 }
 0x8da   :  { %1771 = vst.msk [vmem:[%s2783_s8 + $0x16] sm:$0x1] %vm1715_vm12, %v1769_v42 }
 0x8db   :  { %1791 = vst.msk [vmem:[%s2783_s8 + $0x16] sm:$0x2] %vm1746_vm0, %v1769_v42 }
 0x8df   :  { %v1785_v43 = vpop.permute.xlu1 %1784  ;;  %v1781_v44 = vpop.permute.xlu0 %1780 }
 0x8e0   :  { %1787 = vst.msk [vmem:[%s2783_s8 + $0x1e] sm:$0x1] %vm1715_vm12, %v1785_v43 }
 0x8e1   :  { %1795 = vst.msk [vmem:[%s2783_s8 + $0x1e] sm:$0x2] %vm1746_vm0, %v1785_v43 }
 0x8e2   :  { %1783 = vst.msk [vmem:[%s2783_s8 + $0x1c] sm:$0x1] %vm1715_vm12, %v1781_v44 }
 0x8e3   :  { %1794 = vst.msk [vmem:[%s2783_s8 + $0x1c] sm:$0x2] %vm1746_vm0, %v1781_v44 }
 0x8e4   :  { %1800 = vsyncpa [#allocation5], 1 }
 0x8e5   :  { %1801 = vsyncpa [#allocation7], 1 }
 0x8e6   :  { %1802 = vsyncpa [#allocation10], 1 }
 0x8e7   :  { %1803 = vsyncpa [#allocation13], 1 }

</bundles_post_ra>
